<compile_context>
chip_gen: v7x
topology: tpu7x:2x2x1
jax: 0.10.0
libtpu: 0.0.40
codegen_flags: <defaults>
</compile_context>

<pallas_src>
import functools

import jax
import jax.numpy as jnp
from jax.experimental import pallas as pl
from jax.experimental.pallas import tpu as pltpu


# ---------------------------------------------------------------------------
# helpers
# ---------------------------------------------------------------------------
def _pick_tile(n, cap, mult):
    """Largest tile <= cap that divides n and is a multiple of `mult` (else n)."""
    if n <= cap:
        return n
    t = (cap // mult) * mult
    while t >= mult:
        if n % t == 0:
            return t
        t -= mult
    return n


def _dotT(w, x):
    """(Cout, Cin) @ (Cin, Nt) -> (Cout, Nt), bf16 operands, f32 MXU accumulation."""
    return jax.lax.dot_general(
        w, x, (((1,), (0,)), ((), ())), preferred_element_type=jnp.float32
    )


# ---------------------------------------------------------------------------
# Kernel 1: pairwise (negative squared) distance, tiled over query points
#   D[i, j] = 2 <x_i, x_j> - ||x_i||^2 - ||x_j||^2   (larger == closer)
# ---------------------------------------------------------------------------
def _pairwise_dist_kernel(xti_ref, xt_ref, d_ref):
    xti = xti_ref[...]                                   # (TN, C)
    xt = xt_ref[...]                                     # (N,  C)
    g = jax.lax.dot_general(
        xti, xt, (((1,), (1,)), ((), ())), preferred_element_type=jnp.float32
    )                                                    # (TN, N)
    sq_i = jnp.sum(xti * xti, axis=1, keepdims=True)     # (TN, 1)
    sq_a = jnp.sum(xt * xt, axis=1, keepdims=True)       # (N, 1)
    d_ref[...] = 2.0 * g - sq_i - jnp.transpose(sq_a)


def pairwise_distance(xt):
    """xt: [B, N, C] f32 -> [B, N, N] f32, row-tiled so the output block stays small."""
    B, N, C = xt.shape
    tn = _pick_tile(N, 256, 8)
    return pl.pallas_call(
        _pairwise_dist_kernel,
        out_shape=jax.ShapeDtypeStruct((B, N, N), jnp.float32),
        grid=(B, N // tn),
        in_specs=[
            pl.BlockSpec((None, tn, C), lambda b, i: (b, i, 0)),
            pl.BlockSpec((None, N, C), lambda b, i: (b, 0, 0)),
        ],
        out_specs=pl.BlockSpec((None, tn, N), lambda b, i: (b, i, 0)),
        compiler_params=pltpu.CompilerParams(
            dimension_semantics=("parallel", "parallel")),
    )(xt, xt)


def knn_indices(x_cn, k):
    """x_cn: [B, C, N] f32 -> idx [B, N, K] of k nearest neighbors."""
    xt = jnp.transpose(x_cn, (0, 2, 1))      # [B, N, C]  (small tensor, cheap glue)
    d = pairwise_distance(xt)                # [B, N, N]  Pallas
    # TODO(synk): top_k has no clean Pallas TPU primitive; selection stays in XLA.
    return jax.lax.top_k(d, k)[1]


def gather_neighbors(x_cn, idx):
    """x_cn: [B, C, N], idx: [B, N, K] -> neighbor features [B, K, C, N]."""
    idx_t = jnp.transpose(idx, (0, 2, 1))    # [B, K, N]  (tiny int tensor)
    # TODO(synk): gather stays in XLA (take_along_axis); an in-kernel DMA gather
    # would need per-row copies / fragile dynamic-gather lowering.
    return jnp.take_along_axis(x_cn[:, None, :, :], idx_t[:, :, None, :], axis=3)


# ---------------------------------------------------------------------------
# Kernel 2: fused edge-conv (1x1 conv + folded eval-BN + LeakyReLU + max over K)
#   Single-source version: used for conv1 and conv_down_2.
#   y = max_k( Wd @ nbr_k ) + Wc @ ctr + shift  ;  LeakyReLU(0.2)
#   (max commutes with the monotone k-independent epilogue.)
# ---------------------------------------------------------------------------
def _edge_conv_kernel(nbr_ref, ctr_ref, wd_ref, wc_ref, shift_ref, out_ref, *, num_k):
    wd = wd_ref[...]                                   # (Cout, C) bf16
    m = _dotT(wd, nbr_ref[0])                          # (Cout, TN) f32
    for kk in range(1, num_k):                         # K folded into the body
        m = jnp.maximum(m, _dotT(wd, nbr_ref[kk]))
    y = m + _dotT(wc_ref[...], ctr_ref[...]) + shift_ref[...]
    out_ref[...] = jnp.where(y > 0.0, y, 0.2 * y)      # LeakyReLU(negative_slope=0.2)


def edge_conv(nbr, ctr, wd, wc, shift):
    """nbr: [B,K,C,N] bf16, ctr: [B,C,N] bf16, wd/wc: [Cout,C] bf16, shift: [Cout,1] f32
    -> [B, Cout, N] f32 (max over K already applied), lane-dense in N."""
    B, K, C, N = nbr.shape
    Cout = wd.shape[0]
    tn = _pick_tile(N, 512, 128)
    return pl.pallas_call(
        functools.partial(_edge_conv_kernel, num_k=K),
        out_shape=jax.ShapeDtypeStruct((B, Cout, N), jnp.float32),
        grid=(B, N // tn),
        in_specs=[
            pl.BlockSpec((None, K, C, tn), lambda b, i: (b, 0, 0, i)),
            pl.BlockSpec((None, C, tn), lambda b, i: (b, 0, i)),
            pl.BlockSpec((Cout, C), lambda b, i: (0, 0)),
            pl.BlockSpec((Cout, C), lambda b, i: (0, 0)),
            pl.BlockSpec((Cout, 1), lambda b, i: (0, 0)),
        ],
        out_specs=pl.BlockSpec((None, Cout, tn), lambda b, i: (b, 0, i)),
        compiler_params=pltpu.CompilerParams(
            dimension_semantics=("parallel", "parallel")),
    )(nbr, ctr, wd, wc, shift)


# ---------------------------------------------------------------------------
# Kernel 3: fused conv2 + conv_down_1.
#   Both consume the same neighbor tensor of x1_max (read from HBM once), plus
#   conv2 also reuses the conv1 neighbor tensor of the raw coords.
# ---------------------------------------------------------------------------
def _edge_conv2_fused_kernel(
        xnbr_ref, mnbr_ref, xctr_ref, mctr_ref,
        w2dx_ref, w2dm_ref, w2cx_ref, w2cm_ref, shift2_ref,
        wd1d_ref, wd1c_ref, shiftd1_ref,
        out2_ref, outd1_ref, *, num_k):
    w2dx = w2dx_ref[...]
    w2dm = w2dm_ref[...]
    wd1d = wd1d_ref[...]
    xk = xnbr_ref[0]
    mk = mnbr_ref[0]
    m2 = _dotT(w2dx, xk) + _dotT(w2dm, mk)             # conv2 neighbor term
    md1 = _dotT(wd1d, mk)                              # conv_down_1 neighbor term
    for kk in range(1, num_k):
        xk = xnbr_ref[kk]
        mk = mnbr_ref[kk]
        m2 = jnp.maximum(m2, _dotT(w2dx, xk) + _dotT(w2dm, mk))
        md1 = jnp.maximum(md1, _dotT(wd1d, mk))
    xctr = xctr_ref[...]
    mctr = mctr_ref[...]
    y2 = m2 + _dotT(w2cx_ref[...], xctr) + _dotT(w2cm_ref[...], mctr) + shift2_ref[...]
    out2_ref[...] = jnp.where(y2 > 0.0, y2, 0.2 * y2)
    yd1 = md1 + _dotT(wd1c_ref[...], mctr) + shiftd1_ref[...]
    outd1_ref[...] = jnp.where(yd1 > 0.0, yd1, 0.2 * yd1)


def edge_conv2_fused(xnbr, mnbr, xctr, mctr,
                     w2dx, w2dm, w2cx, w2cm, shift2,
                     wd1d, wd1c, shiftd1):
    B, K, Cx, N = xnbr.shape
    Cm = mnbr.shape[2]
    Cout = w2dx.shape[0]
    tn = _pick_tile(N, 256, 128)   # smaller tile: more live operands/outputs in-flight
    return pl.pallas_call(
        functools.partial(_edge_conv2_fused_kernel, num_k=K),
        out_shape=(jax.ShapeDtypeStruct((B, Cout, N), jnp.float32),
                   jax.ShapeDtypeStruct((B, Cout, N), jnp.float32)),
        grid=(B, N // tn),
        in_specs=[
            pl.BlockSpec((None, K, Cx, tn), lambda b, i: (b, 0, 0, i)),
            pl.BlockSpec((None, K, Cm, tn), lambda b, i: (b, 0, 0, i)),
            pl.BlockSpec((None, Cx, tn), lambda b, i: (b, 0, i)),
            pl.BlockSpec((None, Cm, tn), lambda b, i: (b, 0, i)),
            pl.BlockSpec((Cout, Cx), lambda b, i: (0, 0)),
            pl.BlockSpec((Cout, Cm), lambda b, i: (0, 0)),
            pl.BlockSpec((Cout, Cx), lambda b, i: (0, 0)),
            pl.BlockSpec((Cout, Cm), lambda b, i: (0, 0)),
            pl.BlockSpec((Cout, 1), lambda b, i: (0, 0)),
            pl.BlockSpec((Cout, Cm), lambda b, i: (0, 0)),
            pl.BlockSpec((Cout, Cm), lambda b, i: (0, 0)),
            pl.BlockSpec((Cout, 1), lambda b, i: (0, 0)),
        ],
        out_specs=(pl.BlockSpec((None, Cout, tn), lambda b, i: (b, 0, i)),
                   pl.BlockSpec((None, Cout, tn), lambda b, i: (b, 0, i))),
        compiler_params=pltpu.CompilerParams(
            dimension_semantics=("parallel", "parallel")),
    )(xnbr, mnbr, xctr, mctr, w2dx, w2dm, w2cx, w2cm, shift2, wd1d, wd1c, shiftd1)


# ---------------------------------------------------------------------------
# Parameters (deterministic, synthetic) and eval-BN folding.
# Conv weights stored in torch layout [Cout, Cin]; the unused nn.Linear layers
# are never touched by forward() and are omitted.
# ---------------------------------------------------------------------------
def init_params(key):
    def conv_bn(key, cout, cin):
        kw, kg, kb = jax.random.split(key, 3)
        return dict(
            w=jax.random.normal(kw, (cout, cin), jnp.float32) * 0.1,  # Conv2d 1x1, no bias
            gamma=1.0 + 0.1 * jax.random.normal(kg, (cout,), jnp.float32),
            beta=0.1 * jax.random.normal(kb, (cout,), jnp.float32),
        )

    k1, k2, k3, k4 = jax.random.split(key, 4)
    return dict(
        conv1=conv_bn(k1, 16, 6),
        conv2=conv_bn(k2, 32, 38),
        conv_down_1=conv_bn(k3, 32, 32),
        conv_down_2=conv_bn(k4, 32, 64),
    )


_BN_EPS = 1e-5


def _fold_bn(p):
    """Eval-mode BN (running_mean=0, running_var=1): fold the scale into the weight."""
    scale = (p["gamma"] / jnp.sqrt(1.0 + _BN_EPS))[:, None]
    return p["w"] * scale, p["beta"][:, None].astype(jnp.float32)


def _split_edge_weight(w, c):
    """W @ [nbr - ctr ; ctr] == W[:, :c] @ nbr + (W[:, c:] - W[:, :c]) @ ctr."""
    wd = w[:, :c]
    wc = w[:, c:] - w[:, :c]
    return wd.astype(jnp.bfloat16), wc.astype(jnp.bfloat16)


# ---------------------------------------------------------------------------
# Full forward pass
# ---------------------------------------------------------------------------
@functools.partial(jax.jit, static_argnames=("k",))
def model_forward(x_in, params, k):
    # x_in: [1, 3, B, N] -> x [B, 3, N]   (torch: squeeze(0).permute(1, 0, 2))
    x = jnp.transpose(x_in[0], (1, 0, 2))
    B, _, N = x.shape

    # ---- conv1: edge conv on raw coords --------------------------------------
    w1, shift1 = _fold_bn(params["conv1"])                     # (16, 6)
    w1d, w1c = _split_edge_weight(w1, 3)
    idx1 = knn_indices(x, k)                                   # [B, N, K]
    x_bf = x.astype(jnp.bfloat16)
    x_nbr = gather_neighbors(x_bf, idx1)                       # [B, K, 3, N] bf16
    x1_max = edge_conv(x_nbr, x_bf, w1d, w1c, shift1)          # [B, 16, N] f32

    # ---- conv2 (cat(x1_gf, gf(x1_max))) + conv_down_1 (gf(x1_max)), fused ----
    w2, shift2 = _fold_bn(params["conv2"])   # (32, 38) channels: [xd 0:3, xc 3:6, md 6:22, mc 22:38]
    w2dx = w2[:, 0:3].astype(jnp.bfloat16)
    w2cx = (w2[:, 3:6] - w2[:, 0:3]).astype(jnp.bfloat16)
    w2dm = w2[:, 6:22].astype(jnp.bfloat16)
    w2cm = (w2[:, 22:38] - w2[:, 6:22]).astype(jnp.bfloat16)
    wd1, shiftd1 = _fold_bn(params["conv_down_1"])             # (32, 32)
    wd1d, wd1c = _split_edge_weight(wd1, 16)

    idx2 = knn_indices(x1_max, k)
    m_bf = x1_max.astype(jnp.bfloat16)
    m_nbr = gather_neighbors(m_bf, idx2)                       # [B, K, 16, N] bf16
    x2_max, x_down_1 = edge_conv2_fused(
        x_nbr, m_nbr, x_bf, m_bf,
        w2dx, w2dm, w2cx, w2cm, shift2, wd1d, wd1c, shiftd1)   # each [B, 32, N] f32

    # ---- conv_down_2: edge conv on x2_max ------------------------------------
    wd2, shiftd2 = _fold_bn(params["conv_down_2"])             # (32, 64)
    wd2d, wd2c = _split_edge_weight(wd2, 32)
    idx3 = knn_indices(x2_max, k)
    p_bf = x2_max.astype(jnp.bfloat16)
    p_nbr = gather_neighbors(p_bf, idx3)                       # [B, K, 32, N] bf16
    x_down_2 = edge_conv(p_nbr, p_bf, wd2d, wd2c, shiftd2)     # [B, 32, N] f32

    # ---- head: concat is already torch [B, C, N] layout (no transposes) ------
    xc = jnp.concatenate([x_down_1, x_down_2], axis=1)         # [B, 64, N]
    xv = xc.reshape(B, -1, 64)            # same raw row-major reshape as torch .view
    return jnp.mean(xv, axis=1)           # [B, 64]


if __name__ == "__main__":
    key = jax.random.PRNGKey(0)
    k_knn = 4        # module default is k=20; small k for the small test N
    B, C, N = 2, 3, 16

    kx, kp = jax.random.split(key)
    x_in = jax.random.normal(kx, (1, C, B, N), jnp.float32)    # torch forward input
    params = init_params(kp)

    out = model_forward(x_in, params, k_knn)
    out = jax.block_until_ready(out)
    assert out.shape == (B, 64), out.shape
    assert bool(jnp.all(jnp.isfinite(out)))
    print("KERNEL_OK")
</pallas_src>

<mosaic_0001>
module attributes {stable_mosaic.version = 11 : i64} {
  func.func @_pairwise_dist_kernel(%arg0: i32, %arg1: i32, %arg2: memref<1x16x3xf32, #tpu.memory_space<vmem>>, %arg3: memref<1x16x3xf32, #tpu.memory_space<vmem>>, %arg4: memref<1x16x16xf32, #tpu.memory_space<vmem>>) attributes {dimension_semantics = [#tpu.dimension_semantics<parallel>, #tpu.dimension_semantics<parallel>], iteration_bounds = array<i64: 2, 1>, scalar_prefetch = 0 : i64, scratch_operands = 0 : i64, tpu.core_type = #tpu.core_type<tc>, window_params = [{transform_indices = @transform_0, window_bounds = array<i64: 1, 16, 3>}, {transform_indices = @transform_1, window_bounds = array<i64: 1, 16, 3>}, {transform_indices = @transform_2, window_bounds = array<i64: 1, 16, 16>}]} {
    %c0 = arith.constant 0 : index
    %c0_0 = arith.constant 0 : index
    %c0_1 = arith.constant 0 : index
    %0 = vector.load %arg2[%c0, %c0_0, %c0_1] : memref<1x16x3xf32, #tpu.memory_space<vmem>>, vector<1x16x3xf32>
    %1 = vector.shape_cast %0 : vector<1x16x3xf32> to vector<16x3xf32>
    %c0_2 = arith.constant 0 : index
    %c0_3 = arith.constant 0 : index
    %c0_4 = arith.constant 0 : index
    %2 = vector.load %arg3[%c0_2, %c0_3, %c0_4] : memref<1x16x3xf32, #tpu.memory_space<vmem>>, vector<1x16x3xf32>
    %3 = vector.shape_cast %2 : vector<1x16x3xf32> to vector<16x3xf32>
    %cst = arith.constant dense<0.000000e+00> : vector<16x16xf32>
    %4 = tpu.matmul %1, %3, %cst {dimension_numbers = #tpu.dot_dimension_numbers<[1], [1], [0], [0], [0, 0, 1, 0], [], []>} : vector<16x3xf32>, vector<16x3xf32>, vector<16x16xf32> -> vector<16x16xf32>
    %5 = arith.mulf %1, %1 : vector<16x3xf32>
    %cst_5 = arith.constant dense<0.000000e+00> : vector<16xf32>
    %6 = vector.multi_reduction <add>, %5, %cst_5 [1] : vector<16x3xf32> to vector<16xf32>
    %7 = vector.shape_cast %6 : vector<16xf32> to vector<16x1xf32>
    %8 = arith.mulf %3, %3 : vector<16x3xf32>
    %cst_6 = arith.constant dense<0.000000e+00> : vector<16xf32>
    %9 = vector.multi_reduction <add>, %8, %cst_6 [1] : vector<16x3xf32> to vector<16xf32>
    %10 = vector.shape_cast %9 : vector<16xf32> to vector<16x1xf32>
    %cst_7 = arith.constant 2.000000e+00 : f32
    %11 = vector.broadcast %cst_7 : f32 to vector<16x16xf32>
    %12 = arith.mulf %11, %4 : vector<16x16xf32>
    %13 = vector.broadcast %7 : vector<16x1xf32> to vector<16x16xf32>
    %14 = arith.subf %12, %13 : vector<16x16xf32>
    %15 = tpu.transpose %10, [1, 0] : vector<16x1xf32> -> vector<1x16xf32>
    %16 = vector.broadcast %15 : vector<1x16xf32> to vector<16x16xf32>
    %17 = arith.subf %14, %16 : vector<16x16xf32>
    %c0_8 = arith.constant 0 : index
    %c0_9 = arith.constant 0 : index
    %c0_10 = arith.constant 0 : index
    %18 = vector.load %arg4[%c0_8, %c0_9, %c0_10] : memref<1x16x16xf32, #tpu.memory_space<vmem>>, vector<1x16x16xf32>
    %19 = vector.shape_cast %18 : vector<1x16x16xf32> to vector<16x16xf32>
    %20 = vector.shape_cast %17 : vector<16x16xf32> to vector<1x16x16xf32>
    tpu.vector_store %arg4[%c0_8, %c0_9, %c0_10], %20 {strides = array<i32>} : memref<1x16x16xf32, #tpu.memory_space<vmem>>, vector<1x16x16xf32>,
    return
  }
  func.func @transform_0(%arg0: i32, %arg1: i32) -> (i32, i32, i32) {
    %c0_i32 = arith.constant 0 : i32
    %c0_i32_0 = arith.constant 0 : i32
    return %arg0, %arg1, %c0_i32 : i32, i32, i32
  }
  func.func @transform_1(%arg0: i32, %arg1: i32) -> (i32, i32, i32) {
    %c0_i32 = arith.constant 0 : i32
    %c0_i32_0 = arith.constant 0 : i32
    %c0_i32_1 = arith.constant 0 : i32
    return %arg0, %c0_i32, %c0_i32_0 : i32, i32, i32
  }
  func.func @transform_2(%arg0: i32, %arg1: i32) -> (i32, i32, i32) {
    %c0_i32 = arith.constant 0 : i32
    %c0_i32_0 = arith.constant 0 : i32
    return %arg0, %arg1, %c0_i32 : i32, i32, i32
  }
}

module attributes {stable_mosaic.version = 11 : i64} {
  func.func @_pairwise_dist_kernel(%arg0: i32, %arg1: i32, %arg2: memref<1x16x16xf32, #tpu.memory_space<vmem>>, %arg3: memref<1x16x16xf32, #tpu.memory_space<vmem>>, %arg4: memref<1x16x16xf32, #tpu.memory_space<vmem>>) attributes {dimension_semantics = [#tpu.dimension_semantics<parallel>, #tpu.dimension_semantics<parallel>], iteration_bounds = array<i64: 2, 1>, scalar_prefetch = 0 : i64, scratch_operands = 0 : i64, tpu.core_type = #tpu.core_type<tc>, window_params = [{transform_indices = @transform_0, window_bounds = array<i64: 1, 16, 16>}, {transform_indices = @transform_1, window_bounds = array<i64: 1, 16, 16>}, {transform_indices = @transform_2, window_bounds = array<i64: 1, 16, 16>}]} {
    %c0 = arith.constant 0 : index
    %c0_0 = arith.constant 0 : index
    %c0_1 = arith.constant 0 : index
    %0 = vector.load %arg2[%c0, %c0_0, %c0_1] : memref<1x16x16xf32, #tpu.memory_space<vmem>>, vector<1x16x16xf32>
    %1 = vector.shape_cast %0 : vector<1x16x16xf32> to vector<16x16xf32>
    %c0_2 = arith.constant 0 : index
    %c0_3 = arith.constant 0 : index
    %c0_4 = arith.constant 0 : index
    %2 = vector.load %arg3[%c0_2, %c0_3, %c0_4] : memref<1x16x16xf32, #tpu.memory_space<vmem>>, vector<1x16x16xf32>
    %3 = vector.shape_cast %2 : vector<1x16x16xf32> to vector<16x16xf32>
    %cst = arith.constant dense<0.000000e+00> : vector<16x16xf32>
    %4 = tpu.matmul %1, %3, %cst {dimension_numbers = #tpu.dot_dimension_numbers<[1], [1], [0], [0], [0, 0, 1, 0], [], []>} : vector<16x16xf32>, vector<16x16xf32>, vector<16x16xf32> -> vector<16x16xf32>
    %5 = arith.mulf %1, %1 : vector<16x16xf32>
    %cst_5 = arith.constant dense<0.000000e+00> : vector<16xf32>
    %6 = vector.multi_reduction <add>, %5, %cst_5 [1] : vector<16x16xf32> to vector<16xf32>
    %7 = vector.shape_cast %6 : vector<16xf32> to vector<16x1xf32>
    %8 = arith.mulf %3, %3 : vector<16x16xf32>
    %cst_6 = arith.constant dense<0.000000e+00> : vector<16xf32>
    %9 = vector.multi_reduction <add>, %8, %cst_6 [1] : vector<16x16xf32> to vector<16xf32>
    %10 = vector.shape_cast %9 : vector<16xf32> to vector<16x1xf32>
    %cst_7 = arith.constant 2.000000e+00 : f32
    %11 = vector.broadcast %cst_7 : f32 to vector<16x16xf32>
    %12 = arith.mulf %11, %4 : vector<16x16xf32>
    %13 = vector.broadcast %7 : vector<16x1xf32> to vector<16x16xf32>
    %14 = arith.subf %12, %13 : vector<16x16xf32>
    %15 = tpu.transpose %10, [1, 0] : vector<16x1xf32> -> vector<1x16xf32>
    %16 = vector.broadcast %15 : vector<1x16xf32> to vector<16x16xf32>
    %17 = arith.subf %14, %16 : vector<16x16xf32>
    %c0_8 = arith.constant 0 : index
    %c0_9 = arith.constant 0 : index
    %c0_10 = arith.constant 0 : index
    %18 = vector.load %arg4[%c0_8, %c0_9, %c0_10] : memref<1x16x16xf32, #tpu.memory_space<vmem>>, vector<1x16x16xf32>
    %19 = vector.shape_cast %18 : vector<1x16x16xf32> to vector<16x16xf32>
    %20 = vector.shape_cast %17 : vector<16x16xf32> to vector<1x16x16xf32>
    tpu.vector_store %arg4[%c0_8, %c0_9, %c0_10], %20 {strides = array<i32>} : memref<1x16x16xf32, #tpu.memory_space<vmem>>, vector<1x16x16xf32>,
    return
  }
  func.func @transform_0(%arg0: i32, %arg1: i32) -> (i32, i32, i32) {
    %c0_i32 = arith.constant 0 : i32
    %c0_i32_0 = arith.constant 0 : i32
    return %arg0, %arg1, %c0_i32 : i32, i32, i32
  }
  func.func @transform_1(%arg0: i32, %arg1: i32) -> (i32, i32, i32) {
    %c0_i32 = arith.constant 0 : i32
    %c0_i32_0 = arith.constant 0 : i32
    %c0_i32_1 = arith.constant 0 : i32
    return %arg0, %c0_i32, %c0_i32_0 : i32, i32, i32
  }
  func.func @transform_2(%arg0: i32, %arg1: i32) -> (i32, i32, i32) {
    %c0_i32 = arith.constant 0 : i32
    %c0_i32_0 = arith.constant 0 : i32
    return %arg0, %arg1, %c0_i32 : i32, i32, i32
  }
}

module attributes {stable_mosaic.version = 11 : i64} {
  func.func @_edge_conv_kernel(%arg0: i32, %arg1: i32, %arg2: memref<1x4x3x16xbf16, #tpu.memory_space<vmem>>, %arg3: memref<1x3x16xbf16, #tpu.memory_space<vmem>>, %arg4: memref<16x3xbf16, #tpu.memory_space<vmem>>, %arg5: memref<16x3xbf16, #tpu.memory_space<vmem>>, %arg6: memref<16x1xf32, #tpu.memory_space<vmem>>, %arg7: memref<1x16x16xf32, #tpu.memory_space<vmem>>) attributes {dimension_semantics = [#tpu.dimension_semantics<parallel>, #tpu.dimension_semantics<parallel>], iteration_bounds = array<i64: 2, 1>, scalar_prefetch = 0 : i64, scratch_operands = 0 : i64, tpu.core_type = #tpu.core_type<tc>, window_params = [{transform_indices = @transform_0, window_bounds = array<i64: 1, 4, 3, 16>}, {transform_indices = @transform_1, window_bounds = array<i64: 1, 3, 16>}, {pipeline_mode = #tpu.pipeline_mode<synchronous>, transform_indices = @transform_2, window_bounds = array<i64: 16, 3>}, {pipeline_mode = #tpu.pipeline_mode<synchronous>, transform_indices = @transform_3, window_bounds = array<i64: 16, 3>}, {pipeline_mode = #tpu.pipeline_mode<synchronous>, transform_indices = @transform_4, window_bounds = array<i64: 16, 1>}, {transform_indices = @transform_5, window_bounds = array<i64: 1, 16, 16>}]} {
    %c0 = arith.constant 0 : index
    %c0_0 = arith.constant 0 : index
    %0 = vector.load %arg4[%c0, %c0_0] : memref<16x3xbf16, #tpu.memory_space<vmem>>, vector<16x3xbf16>
    %c0_1 = arith.constant 0 : index
    %c0_2 = arith.constant 0 : index
    %c0_3 = arith.constant 0 : index
    %c0_4 = arith.constant 0 : index
    %1 = vector.load %arg2[%c0_1, %c0_2, %c0_3, %c0_4] : memref<1x4x3x16xbf16, #tpu.memory_space<vmem>>, vector<1x1x3x16xbf16>
    %2 = vector.shape_cast %1 : vector<1x1x3x16xbf16> to vector<3x16xbf16>
    %cst = arith.constant dense<0.000000e+00> : vector<16x16xf32>
    %3 = tpu.matmul %0, %2, %cst {dimension_numbers = #tpu.dot_dimension_numbers<[1], [0], [0], [1], [0, 0, 1, 1], [], []>} : vector<16x3xbf16>, vector<3x16xbf16>, vector<16x16xf32> -> vector<16x16xf32>
    %c0_5 = arith.constant 0 : index
    %c1 = arith.constant 1 : index
    %c0_6 = arith.constant 0 : index
    %c0_7 = arith.constant 0 : index
    %4 = vector.load %arg2[%c0_5, %c1, %c0_6, %c0_7] : memref<1x4x3x16xbf16, #tpu.memory_space<vmem>>, vector<1x1x3x16xbf16>
    %5 = vector.shape_cast %4 : vector<1x1x3x16xbf16> to vector<3x16xbf16>
    %cst_8 = arith.constant dense<0.000000e+00> : vector<16x16xf32>
    %6 = tpu.matmul %0, %5, %cst_8 {dimension_numbers = #tpu.dot_dimension_numbers<[1], [0], [0], [1], [0, 0, 1, 1], [], []>} : vector<16x3xbf16>, vector<3x16xbf16>, vector<16x16xf32> -> vector<16x16xf32>
    %7 = arith.maximumf %3, %6 : vector<16x16xf32>
    %c0_9 = arith.constant 0 : index
    %c2 = arith.constant 2 : index
    %c0_10 = arith.constant 0 : index
    %c0_11 = arith.constant 0 : index
    %8 = vector.load %arg2[%c0_9, %c2, %c0_10, %c0_11] : memref<1x4x3x16xbf16, #tpu.memory_space<vmem>>, vector<1x1x3x16xbf16>
    %9 = vector.shape_cast %8 : vector<1x1x3x16xbf16> to vector<3x16xbf16>
    %cst_12 = arith.constant dense<0.000000e+00> : vector<16x16xf32>
    %10 = tpu.matmul %0, %9, %cst_12 {dimension_numbers = #tpu.dot_dimension_numbers<[1], [0], [0], [1], [0, 0, 1, 1], [], []>} : vector<16x3xbf16>, vector<3x16xbf16>, vector<16x16xf32> -> vector<16x16xf32>
    %11 = arith.maximumf %7, %10 : vector<16x16xf32>
    %c0_13 = arith.constant 0 : index
    %c3 = arith.constant 3 : index
    %c0_14 = arith.constant 0 : index
    %c0_15 = arith.constant 0 : index
    %12 = vector.load %arg2[%c0_13, %c3, %c0_14, %c0_15] : memref<1x4x3x16xbf16, #tpu.memory_space<vmem>>, vector<1x1x3x16xbf16>
    %13 = vector.shape_cast %12 : vector<1x1x3x16xbf16> to vector<3x16xbf16>
    %cst_16 = arith.constant dense<0.000000e+00> : vector<16x16xf32>
    %14 = tpu.matmul %0, %13, %cst_16 {dimension_numbers = #tpu.dot_dimension_numbers<[1], [0], [0], [1], [0, 0, 1, 1], [], []>} : vector<16x3xbf16>, vector<3x16xbf16>, vector<16x16xf32> -> vector<16x16xf32>
    %15 = arith.maximumf %11, %14 : vector<16x16xf32>
    %c0_17 = arith.constant 0 : index
    %c0_18 = arith.constant 0 : index
    %16 = vector.load %arg5[%c0_17, %c0_18] : memref<16x3xbf16, #tpu.memory_space<vmem>>, vector<16x3xbf16>
    %c0_19 = arith.constant 0 : index
    %c0_20 = arith.constant 0 : index
    %c0_21 = arith.constant 0 : index
    %17 = vector.load %arg3[%c0_19, %c0_20, %c0_21] : memref<1x3x16xbf16, #tpu.memory_space<vmem>>, vector<1x3x16xbf16>
    %18 = vector.shape_cast %17 : vector<1x3x16xbf16> to vector<3x16xbf16>
    %cst_22 = arith.constant dense<0.000000e+00> : vector<16x16xf32>
    %19 = tpu.matmul %16, %18, %cst_22 {dimension_numbers = #tpu.dot_dimension_numbers<[1], [0], [0], [1], [0, 0, 1, 1], [], []>} : vector<16x3xbf16>, vector<3x16xbf16>, vector<16x16xf32> -> vector<16x16xf32>
    %20 = arith.addf %15, %19 : vector<16x16xf32>
    %c0_23 = arith.constant 0 : index
    %c0_24 = arith.constant 0 : index
    %21 = vector.load %arg6[%c0_23, %c0_24] : memref<16x1xf32, #tpu.memory_space<vmem>>, vector<16x1xf32>
    %22 = vector.broadcast %21 : vector<16x1xf32> to vector<16x16xf32>
    %23 = arith.addf %20, %22 : vector<16x16xf32>
    %cst_25 = arith.constant 0.000000e+00 : f32
    %24 = vector.broadcast %cst_25 : f32 to vector<16x16xf32>
    %25 = arith.cmpf ogt, %23, %24 : vector<16x16xf32>
    %cst_26 = arith.constant 2.000000e-01 : f32
    %26 = vector.broadcast %cst_26 : f32 to vector<16x16xf32>
    %27 = arith.mulf %26, %23 : vector<16x16xf32>
    %28 = arith.select %25, %23, %27 : vector<16x16xi1>, vector<16x16xf32>
    %c0_27 = arith.constant 0 : index
    %c0_28 = arith.constant 0 : index
    %c0_29 = arith.constant 0 : index
    %29 = vector.load %arg7[%c0_27, %c0_28, %c0_29] : memref<1x16x16xf32, #tpu.memory_space<vmem>>, vector<1x16x16xf32>
    %30 = vector.shape_cast %29 : vector<1x16x16xf32> to vector<16x16xf32>
    %31 = vector.shape_cast %28 : vector<16x16xf32> to vector<1x16x16xf32>
    tpu.vector_store %arg7[%c0_27, %c0_28, %c0_29], %31 {strides = array<i32>} : memref<1x16x16xf32, #tpu.memory_space<vmem>>, vector<1x16x16xf32>,
    return
  }
  func.func @transform_0(%arg0: i32, %arg1: i32) -> (i32, i32, i32, i32) {
    %c0_i32 = arith.constant 0 : i32
    %c0_i32_0 = arith.constant 0 : i32
    %c0_i32_1 = arith.constant 0 : i32
    return %arg0, %c0_i32, %c0_i32_0, %arg1 : i32, i32, i32, i32
  }
  func.func @transform_1(%arg0: i32, %arg1: i32) -> (i32, i32, i32) {
    %c0_i32 = arith.constant 0 : i32
    %c0_i32_0 = arith.constant 0 : i32
    return %arg0, %c0_i32, %arg1 : i32, i32, i32
  }
  func.func @transform_2(%arg0: i32, %arg1: i32) -> (i32, i32) {
    %c0_i32 = arith.constant 0 : i32
    %c0_i32_0 = arith.constant 0 : i32
    %c0_i32_1 = arith.constant 0 : i32
    return %c0_i32, %c0_i32_0 : i32, i32
  }
  func.func @transform_3(%arg0: i32, %arg1: i32) -> (i32, i32) {
    %c0_i32 = arith.constant 0 : i32
    %c0_i32_0 = arith.constant 0 : i32
    %c0_i32_1 = arith.constant 0 : i32
    return %c0_i32, %c0_i32_0 : i32, i32
  }
  func.func @transform_4(%arg0: i32, %arg1: i32) -> (i32, i32) {
    %c0_i32 = arith.constant 0 : i32
    %c0_i32_0 = arith.constant 0 : i32
    %c0_i32_1 = arith.constant 0 : i32
    return %c0_i32, %c0_i32_0 : i32, i32
  }
  func.func @transform_5(%arg0: i32, %arg1: i32) -> (i32, i32, i32) {
    %c0_i32 = arith.constant 0 : i32
    %c0_i32_0 = arith.constant 0 : i32
    return %arg0, %c0_i32, %arg1 : i32, i32, i32
  }
}

module attributes {stable_mosaic.version = 11 : i64} {
  func.func @_pairwise_dist_kernel(%arg0: i32, %arg1: i32, %arg2: memref<1x16x32xf32, #tpu.memory_space<vmem>>, %arg3: memref<1x16x32xf32, #tpu.memory_space<vmem>>, %arg4: memref<1x16x16xf32, #tpu.memory_space<vmem>>) attributes {dimension_semantics = [#tpu.dimension_semantics<parallel>, #tpu.dimension_semantics<parallel>], iteration_bounds = array<i64: 2, 1>, scalar_prefetch = 0 : i64, scratch_operands = 0 : i64, tpu.core_type = #tpu.core_type<tc>, window_params = [{transform_indices = @transform_0, window_bounds = array<i64: 1, 16, 32>}, {transform_indices = @transform_1, window_bounds = array<i64: 1, 16, 32>}, {transform_indices = @transform_2, window_bounds = array<i64: 1, 16, 16>}]} {
    %c0 = arith.constant 0 : index
    %c0_0 = arith.constant 0 : index
    %c0_1 = arith.constant 0 : index
    %0 = vector.load %arg2[%c0, %c0_0, %c0_1] : memref<1x16x32xf32, #tpu.memory_space<vmem>>, vector<1x16x32xf32>
    %1 = vector.shape_cast %0 : vector<1x16x32xf32> to vector<16x32xf32>
    %c0_2 = arith.constant 0 : index
    %c0_3 = arith.constant 0 : index
    %c0_4 = arith.constant 0 : index
    %2 = vector.load %arg3[%c0_2, %c0_3, %c0_4] : memref<1x16x32xf32, #tpu.memory_space<vmem>>, vector<1x16x32xf32>
    %3 = vector.shape_cast %2 : vector<1x16x32xf32> to vector<16x32xf32>
    %cst = arith.constant dense<0.000000e+00> : vector<16x16xf32>
    %4 = tpu.matmul %1, %3, %cst {dimension_numbers = #tpu.dot_dimension_numbers<[1], [1], [0], [0], [0, 0, 1, 0], [], []>} : vector<16x32xf32>, vector<16x32xf32>, vector<16x16xf32> -> vector<16x16xf32>
    %5 = arith.mulf %1, %1 : vector<16x32xf32>
    %cst_5 = arith.constant dense<0.000000e+00> : vector<16xf32>
    %6 = vector.multi_reduction <add>, %5, %cst_5 [1] : vector<16x32xf32> to vector<16xf32>
    %7 = vector.shape_cast %6 : vector<16xf32> to vector<16x1xf32>
    %8 = arith.mulf %3, %3 : vector<16x32xf32>
    %cst_6 = arith.constant dense<0.000000e+00> : vector<16xf32>
    %9 = vector.multi_reduction <add>, %8, %cst_6 [1] : vector<16x32xf32> to vector<16xf32>
    %10 = vector.shape_cast %9 : vector<16xf32> to vector<16x1xf32>
    %cst_7 = arith.constant 2.000000e+00 : f32
    %11 = vector.broadcast %cst_7 : f32 to vector<16x16xf32>
    %12 = arith.mulf %11, %4 : vector<16x16xf32>
    %13 = vector.broadcast %7 : vector<16x1xf32> to vector<16x16xf32>
    %14 = arith.subf %12, %13 : vector<16x16xf32>
    %15 = tpu.transpose %10, [1, 0] : vector<16x1xf32> -> vector<1x16xf32>
    %16 = vector.broadcast %15 : vector<1x16xf32> to vector<16x16xf32>
    %17 = arith.subf %14, %16 : vector<16x16xf32>
    %c0_8 = arith.constant 0 : index
    %c0_9 = arith.constant 0 : index
    %c0_10 = arith.constant 0 : index
    %18 = vector.load %arg4[%c0_8, %c0_9, %c0_10] : memref<1x16x16xf32, #tpu.memory_space<vmem>>, vector<1x16x16xf32>
    %19 = vector.shape_cast %18 : vector<1x16x16xf32> to vector<16x16xf32>
    %20 = vector.shape_cast %17 : vector<16x16xf32> to vector<1x16x16xf32>
    tpu.vector_store %arg4[%c0_8, %c0_9, %c0_10], %20 {strides = array<i32>} : memref<1x16x16xf32, #tpu.memory_space<vmem>>, vector<1x16x16xf32>,
    return
  }
  func.func @transform_0(%arg0: i32, %arg1: i32) -> (i32, i32, i32) {
    %c0_i32 = arith.constant 0 : i32
    %c0_i32_0 = arith.constant 0 : i32
    return %arg0, %arg1, %c0_i32 : i32, i32, i32
  }
  func.func @transform_1(%arg0: i32, %arg1: i32) -> (i32, i32, i32) {
    %c0_i32 = arith.constant 0 : i32
    %c0_i32_0 = arith.constant 0 : i32
    %c0_i32_1 = arith.constant 0 : i32
    return %arg0, %c0_i32, %c0_i32_0 : i32, i32, i32
  }
  func.func @transform_2(%arg0: i32, %arg1: i32) -> (i32, i32, i32) {
    %c0_i32 = arith.constant 0 : i32
    %c0_i32_0 = arith.constant 0 : i32
    return %arg0, %arg1, %c0_i32 : i32, i32, i32
  }
}

module attributes {stable_mosaic.version = 11 : i64} {
  func.func @_edge_conv2_fused_kernel(%arg0: i32, %arg1: i32, %arg2: memref<1x4x3x16xbf16, #tpu.memory_space<vmem>>, %arg3: memref<1x4x16x16xbf16, #tpu.memory_space<vmem>>, %arg4: memref<1x3x16xbf16, #tpu.memory_space<vmem>>, %arg5: memref<1x16x16xbf16, #tpu.memory_space<vmem>>, %arg6: memref<32x3xbf16, #tpu.memory_space<vmem>>, %arg7: memref<32x16xbf16, #tpu.memory_space<vmem>>, %arg8: memref<32x3xbf16, #tpu.memory_space<vmem>>, %arg9: memref<32x16xbf16, #tpu.memory_space<vmem>>, %arg10: memref<32x1xf32, #tpu.memory_space<vmem>>, %arg11: memref<32x16xbf16, #tpu.memory_space<vmem>>, %arg12: memref<32x16xbf16, #tpu.memory_space<vmem>>, %arg13: memref<32x1xf32, #tpu.memory_space<vmem>>, %arg14: memref<1x32x16xf32, #tpu.memory_space<vmem>>, %arg15: memref<1x32x16xf32, #tpu.memory_space<vmem>>) attributes {dimension_semantics = [#tpu.dimension_semantics<parallel>, #tpu.dimension_semantics<parallel>], iteration_bounds = array<i64: 2, 1>, scalar_prefetch = 0 : i64, scratch_operands = 0 : i64, tpu.core_type = #tpu.core_type<tc>, window_params = [{transform_indices = @transform_0, window_bounds = array<i64: 1, 4, 3, 16>}, {transform_indices = @transform_1, window_bounds = array<i64: 1, 4, 16, 16>}, {transform_indices = @transform_2, window_bounds = array<i64: 1, 3, 16>}, {transform_indices = @transform_3, window_bounds = array<i64: 1, 16, 16>}, {pipeline_mode = #tpu.pipeline_mode<synchronous>, transform_indices = @transform_4, window_bounds = array<i64: 32, 3>}, {pipeline_mode = #tpu.pipeline_mode<synchronous>, transform_indices = @transform_5, window_bounds = array<i64: 32, 16>}, {pipeline_mode = #tpu.pipeline_mode<synchronous>, transform_indices = @transform_6, window_bounds = array<i64: 32, 3>}, {pipeline_mode = #tpu.pipeline_mode<synchronous>, transform_indices = @transform_7, window_bounds = array<i64: 32, 16>}, {pipeline_mode = #tpu.pipeline_mode<synchronous>, transform_indices = @transform_8, window_bounds = array<i64: 32, 1>}, {pipeline_mode = #tpu.pipeline_mode<synchronous>, transform_indices = @transform_9, window_bounds = array<i64: 32, 16>}, {pipeline_mode = #tpu.pipeline_mode<synchronous>, transform_indices = @transform_10, window_bounds = array<i64: 32, 16>}, {pipeline_mode = #tpu.pipeline_mode<synchronous>, transform_indices = @transform_11, window_bounds = array<i64: 32, 1>}, {transform_indices = @transform_12, window_bounds = array<i64: 1, 32, 16>}, {transform_indices = @transform_13, window_bounds = array<i64: 1, 32, 16>}]} {
    %c0 = arith.constant 0 : index
    %c0_0 = arith.constant 0 : index
    %0 = vector.load %arg6[%c0, %c0_0] : memref<32x3xbf16, #tpu.memory_space<vmem>>, vector<32x3xbf16>
    %c0_1 = arith.constant 0 : index
    %c0_2 = arith.constant 0 : index
    %1 = vector.load %arg7[%c0_1, %c0_2] : memref<32x16xbf16, #tpu.memory_space<vmem>>, vector<32x16xbf16>
    %c0_3 = arith.constant 0 : index
    %c0_4 = arith.constant 0 : index
    %2 = vector.load %arg11[%c0_3, %c0_4] : memref<32x16xbf16, #tpu.memory_space<vmem>>, vector<32x16xbf16>
    %c0_5 = arith.constant 0 : index
    %c0_6 = arith.constant 0 : index
    %c0_7 = arith.constant 0 : index
    %c0_8 = arith.constant 0 : index
    %3 = vector.load %arg2[%c0_5, %c0_6, %c0_7, %c0_8] : memref<1x4x3x16xbf16, #tpu.memory_space<vmem>>, vector<1x1x3x16xbf16>
    %4 = vector.shape_cast %3 : vector<1x1x3x16xbf16> to vector<3x16xbf16>
    %c0_9 = arith.constant 0 : index
    %c0_10 = arith.constant 0 : index
    %c0_11 = arith.constant 0 : index
    %c0_12 = arith.constant 0 : index
    %5 = vector.load %arg3[%c0_9, %c0_10, %c0_11, %c0_12] : memref<1x4x16x16xbf16, #tpu.memory_space<vmem>>, vector<1x1x16x16xbf16>
    %6 = vector.shape_cast %5 : vector<1x1x16x16xbf16> to vector<16x16xbf16>
    %cst = arith.constant dense<0.000000e+00> : vector<32x16xf32>
    %7 = tpu.matmul %0, %4, %cst {dimension_numbers = #tpu.dot_dimension_numbers<[1], [0], [0], [1], [0, 0, 1, 1], [], []>} : vector<32x3xbf16>, vector<3x16xbf16>, vector<32x16xf32> -> vector<32x16xf32>
    %cst_13 = arith.constant dense<0.000000e+00> : vector<32x16xf32>
    %8 = tpu.matmul %1, %6, %cst_13 {dimension_numbers = #tpu.dot_dimension_numbers<[1], [0], [0], [1], [0, 0, 1, 1], [], []>} : vector<32x16xbf16>, vector<16x16xbf16>, vector<32x16xf32> -> vector<32x16xf32>
    %9 = arith.addf %7, %8 : vector<32x16xf32>
    %cst_14 = arith.constant dense<0.000000e+00> : vector<32x16xf32>
    %10 = tpu.matmul %2, %6, %cst_14 {dimension_numbers = #tpu.dot_dimension_numbers<[1], [0], [0], [1], [0, 0, 1, 1], [], []>} : vector<32x16xbf16>, vector<16x16xbf16>, vector<32x16xf32> -> vector<32x16xf32>
    %c0_15 = arith.constant 0 : index
    %c1 = arith.constant 1 : index
    %c0_16 = arith.constant 0 : index
    %c0_17 = arith.constant 0 : index
    %11 = vector.load %arg2[%c0_15, %c1, %c0_16, %c0_17] : memref<1x4x3x16xbf16, #tpu.memory_space<vmem>>, vector<1x1x3x16xbf16>
    %12 = vector.shape_cast %11 : vector<1x1x3x16xbf16> to vector<3x16xbf16>
    %c0_18 = arith.constant 0 : index
    %c1_19 = arith.constant 1 : index
    %c0_20 = arith.constant 0 : index
    %c0_21 = arith.constant 0 : index
    %13 = vector.load %arg3[%c0_18, %c1_19, %c0_20, %c0_21] : memref<1x4x16x16xbf16, #tpu.memory_space<vmem>>, vector<1x1x16x16xbf16>
    %14 = vector.shape_cast %13 : vector<1x1x16x16xbf16> to vector<16x16xbf16>
    %cst_22 = arith.constant dense<0.000000e+00> : vector<32x16xf32>
    %15 = tpu.matmul %0, %12, %cst_22 {dimension_numbers = #tpu.dot_dimension_numbers<[1], [0], [0], [1], [0, 0, 1, 1], [], []>} : vector<32x3xbf16>, vector<3x16xbf16>, vector<32x16xf32> -> vector<32x16xf32>
    %cst_23 = arith.constant dense<0.000000e+00> : vector<32x16xf32>
    %16 = tpu.matmul %1, %14, %cst_23 {dimension_numbers = #tpu.dot_dimension_numbers<[1], [0], [0], [1], [0, 0, 1, 1], [], []>} : vector<32x16xbf16>, vector<16x16xbf16>, vector<32x16xf32> -> vector<32x16xf32>
    %17 = arith.addf %15, %16 : vector<32x16xf32>
    %18 = arith.maximumf %9, %17 : vector<32x16xf32>
    %cst_24 = arith.constant dense<0.000000e+00> : vector<32x16xf32>
    %19 = tpu.matmul %2, %14, %cst_24 {dimension_numbers = #tpu.dot_dimension_numbers<[1], [0], [0], [1], [0, 0, 1, 1], [], []>} : vector<32x16xbf16>, vector<16x16xbf16>, vector<32x16xf32> -> vector<32x16xf32>
    %20 = arith.maximumf %10, %19 : vector<32x16xf32>
    %c0_25 = arith.constant 0 : index
    %c2 = arith.constant 2 : index
    %c0_26 = arith.constant 0 : index
    %c0_27 = arith.constant 0 : index
    %21 = vector.load %arg2[%c0_25, %c2, %c0_26, %c0_27] : memref<1x4x3x16xbf16, #tpu.memory_space<vmem>>, vector<1x1x3x16xbf16>
    %22 = vector.shape_cast %21 : vector<1x1x3x16xbf16> to vector<3x16xbf16>
    %c0_28 = arith.constant 0 : index
    %c2_29 = arith.constant 2 : index
    %c0_30 = arith.constant 0 : index
    %c0_31 = arith.constant 0 : index
    %23 = vector.load %arg3[%c0_28, %c2_29, %c0_30, %c0_31] : memref<1x4x16x16xbf16, #tpu.memory_space<vmem>>, vector<1x1x16x16xbf16>
    %24 = vector.shape_cast %23 : vector<1x1x16x16xbf16> to vector<16x16xbf16>
    %cst_32 = arith.constant dense<0.000000e+00> : vector<32x16xf32>
    %25 = tpu.matmul %0, %22, %cst_32 {dimension_numbers = #tpu.dot_dimension_numbers<[1], [0], [0], [1], [0, 0, 1, 1], [], []>} : vector<32x3xbf16>, vector<3x16xbf16>, vector<32x16xf32> -> vector<32x16xf32>
    %cst_33 = arith.constant dense<0.000000e+00> : vector<32x16xf32>
    %26 = tpu.matmul %1, %24, %cst_33 {dimension_numbers = #tpu.dot_dimension_numbers<[1], [0], [0], [1], [0, 0, 1, 1], [], []>} : vector<32x16xbf16>, vector<16x16xbf16>, vector<32x16xf32> -> vector<32x16xf32>
    %27 = arith.addf %25, %26 : vector<32x16xf32>
    %28 = arith.maximumf %18, %27 : vector<32x16xf32>
    %cst_34 = arith.constant dense<0.000000e+00> : vector<32x16xf32>
    %29 = tpu.matmul %2, %24, %cst_34 {dimension_numbers = #tpu.dot_dimension_numbers<[1], [0], [0], [1], [0, 0, 1, 1], [], []>} : vector<32x16xbf16>, vector<16x16xbf16>, vector<32x16xf32> -> vector<32x16xf32>
    %30 = arith.maximumf %20, %29 : vector<32x16xf32>
    %c0_35 = arith.constant 0 : index
    %c3 = arith.constant 3 : index
    %c0_36 = arith.constant 0 : index
    %c0_37 = arith.constant 0 : index
    %31 = vector.load %arg2[%c0_35, %c3, %c0_36, %c0_37] : memref<1x4x3x16xbf16, #tpu.memory_space<vmem>>, vector<1x1x3x16xbf16>
    %32 = vector.shape_cast %31 : vector<1x1x3x16xbf16> to vector<3x16xbf16>
    %c0_38 = arith.constant 0 : index
    %c3_39 = arith.constant 3 : index
    %c0_40 = arith.constant 0 : index
    %c0_41 = arith.constant 0 : index
    %33 = vector.load %arg3[%c0_38, %c3_39, %c0_40, %c0_41] : memref<1x4x16x16xbf16, #tpu.memory_space<vmem>>, vector<1x1x16x16xbf16>
    %34 = vector.shape_cast %33 : vector<1x1x16x16xbf16> to vector<16x16xbf16>
    %cst_42 = arith.constant dense<0.000000e+00> : vector<32x16xf32>
    %35 = tpu.matmul %0, %32, %cst_42 {dimension_numbers = #tpu.dot_dimension_numbers<[1], [0], [0], [1], [0, 0, 1, 1], [], []>} : vector<32x3xbf16>, vector<3x16xbf16>, vector<32x16xf32> -> vector<32x16xf32>
    %cst_43 = arith.constant dense<0.000000e+00> : vector<32x16xf32>
    %36 = tpu.matmul %1, %34, %cst_43 {dimension_numbers = #tpu.dot_dimension_numbers<[1], [0], [0], [1], [0, 0, 1, 1], [], []>} : vector<32x16xbf16>, vector<16x16xbf16>, vector<32x16xf32> -> vector<32x16xf32>
    %37 = arith.addf %35, %36 : vector<32x16xf32>
    %38 = arith.maximumf %28, %37 : vector<32x16xf32>
    %cst_44 = arith.constant dense<0.000000e+00> : vector<32x16xf32>
    %39 = tpu.matmul %2, %34, %cst_44 {dimension_numbers = #tpu.dot_dimension_numbers<[1], [0], [0], [1], [0, 0, 1, 1], [], []>} : vector<32x16xbf16>, vector<16x16xbf16>, vector<32x16xf32> -> vector<32x16xf32>
    %40 = arith.maximumf %30, %39 : vector<32x16xf32>
    %c0_45 = arith.constant 0 : index
    %c0_46 = arith.constant 0 : index
    %c0_47 = arith.constant 0 : index
    %41 = vector.load %arg4[%c0_45, %c0_46, %c0_47] : memref<1x3x16xbf16, #tpu.memory_space<vmem>>, vector<1x3x16xbf16>
    %42 = vector.shape_cast %41 : vector<1x3x16xbf16> to vector<3x16xbf16>
    %c0_48 = arith.constant 0 : index
    %c0_49 = arith.constant 0 : index
    %c0_50 = arith.constant 0 : index
    %43 = vector.load %arg5[%c0_48, %c0_49, %c0_50] : memref<1x16x16xbf16, #tpu.memory_space<vmem>>, vector<1x16x16xbf16>
    %44 = vector.shape_cast %43 : vector<1x16x16xbf16> to vector<16x16xbf16>
    %c0_51 = arith.constant 0 : index
    %c0_52 = arith.constant 0 : index
    %45 = vector.load %arg8[%c0_51, %c0_52] : memref<32x3xbf16, #tpu.memory_space<vmem>>, vector<32x3xbf16>
    %cst_53 = arith.constant dense<0.000000e+00> : vector<32x16xf32>
    %46 = tpu.matmul %45, %42, %cst_53 {dimension_numbers = #tpu.dot_dimension_numbers<[1], [0], [0], [1], [0, 0, 1, 1], [], []>} : vector<32x3xbf16>, vector<3x16xbf16>, vector<32x16xf32> -> vector<32x16xf32>
    %47 = arith.addf %38, %46 : vector<32x16xf32>
    %c0_54 = arith.constant 0 : index
    %c0_55 = arith.constant 0 : index
    %48 = vector.load %arg9[%c0_54, %c0_55] : memref<32x16xbf16, #tpu.memory_space<vmem>>, vector<32x16xbf16>
    %cst_56 = arith.constant dense<0.000000e+00> : vector<32x16xf32>
    %49 = tpu.matmul %48, %44, %cst_56 {dimension_numbers = #tpu.dot_dimension_numbers<[1], [0], [0], [1], [0, 0, 1, 1], [], []>} : vector<32x16xbf16>, vector<16x16xbf16>, vector<32x16xf32> -> vector<32x16xf32>
    %50 = arith.addf %47, %49 : vector<32x16xf32>
    %c0_57 = arith.constant 0 : index
    %c0_58 = arith.constant 0 : index
    %51 = vector.load %arg10[%c0_57, %c0_58] : memref<32x1xf32, #tpu.memory_space<vmem>>, vector<32x1xf32>
    %52 = vector.broadcast %51 : vector<32x1xf32> to vector<32x16xf32>
    %53 = arith.addf %50, %52 : vector<32x16xf32>
    %cst_59 = arith.constant 0.000000e+00 : f32
    %54 = vector.broadcast %cst_59 : f32 to vector<32x16xf32>
    %55 = arith.cmpf ogt, %53, %54 : vector<32x16xf32>
    %cst_60 = arith.constant 2.000000e-01 : f32
    %56 = vector.broadcast %cst_60 : f32 to vector<32x16xf32>
    %57 = arith.mulf %56, %53 : vector<32x16xf32>
    %58 = arith.select %55, %53, %57 : vector<32x16xi1>, vector<32x16xf32>
    %c0_61 = arith.constant 0 : index
    %c0_62 = arith.constant 0 : index
    %c0_63 = arith.constant 0 : index
    %59 = vector.load %arg14[%c0_61, %c0_62, %c0_63] : memref<1x32x16xf32, #tpu.memory_space<vmem>>, vector<1x32x16xf32>
    %60 = vector.shape_cast %59 : vector<1x32x16xf32> to vector<32x16xf32>
    %61 = vector.shape_cast %58 : vector<32x16xf32> to vector<1x32x16xf32>
    tpu.vector_store %arg14[%c0_61, %c0_62, %c0_63], %61 {strides = array<i32>} : memref<1x32x16xf32, #tpu.memory_space<vmem>>, vector<1x32x16xf32>,
    %c0_64 = arith.constant 0 : index
    %c0_65 = arith.constant 0 : index
    %62 = vector.load %arg12[%c0_64, %c0_65] : memref<32x16xbf16, #tpu.memory_space<vmem>>, vector<32x16xbf16>
    %cst_66 = arith.constant dense<0.000000e+00> : vector<32x16xf32>
    %63 = tpu.matmul %62, %44, %cst_66 {dimension_numbers = #tpu.dot_dimension_numbers<[1], [0], [0], [1], [0, 0, 1, 1], [], []>} : vector<32x16xbf16>, vector<16x16xbf16>, vector<32x16xf32> -> vector<32x16xf32>
    %64 = arith.addf %40, %63 : vector<32x16xf32>
    %c0_67 = arith.constant 0 : index
    %c0_68 = arith.constant 0 : index
    %65 = vector.load %arg13[%c0_67, %c0_68] : memref<32x1xf32, #tpu.memory_space<vmem>>, vector<32x1xf32>
    %66 = vector.broadcast %65 : vector<32x1xf32> to vector<32x16xf32>
    %67 = arith.addf %64, %66 : vector<32x16xf32>
    %cst_69 = arith.constant 0.000000e+00 : f32
    %68 = vector.broadcast %cst_69 : f32 to vector<32x16xf32>
    %69 = arith.cmpf ogt, %67, %68 : vector<32x16xf32>
    %cst_70 = arith.constant 2.000000e-01 : f32
    %70 = vector.broadcast %cst_70 : f32 to vector<32x16xf32>
    %71 = arith.mulf %70, %67 : vector<32x16xf32>
    %72 = arith.select %69, %67, %71 : vector<32x16xi1>, vector<32x16xf32>
    %c0_71 = arith.constant 0 : index
    %c0_72 = arith.constant 0 : index
    %c0_73 = arith.constant 0 : index
    %73 = vector.load %arg15[%c0_71, %c0_72, %c0_73] : memref<1x32x16xf32, #tpu.memory_space<vmem>>, vector<1x32x16xf32>
    %74 = vector.shape_cast %73 : vector<1x32x16xf32> to vector<32x16xf32>
    %75 = vector.shape_cast %72 : vector<32x16xf32> to vector<1x32x16xf32>
    tpu.vector_store %arg15[%c0_71, %c0_72, %c0_73], %75 {strides = array<i32>} : memref<1x32x16xf32, #tpu.memory_space<vmem>>, vector<1x32x16xf32>,
    return
  }
  func.func @transform_0(%arg0: i32, %arg1: i32) -> (i32, i32, i32, i32) {
    %c0_i32 = arith.constant 0 : i32
    %c0_i32_0 = arith.constant 0 : i32
    %c0_i32_1 = arith.constant 0 : i32
    return %arg0, %c0_i32, %c0_i32_0, %arg1 : i32, i32, i32, i32
  }
  func.func @transform_1(%arg0: i32, %arg1: i32) -> (i32, i32, i32, i32) {
    %c0_i32 = arith.constant 0 : i32
    %c0_i32_0 = arith.constant 0 : i32
    %c0_i32_1 = arith.constant 0 : i32
    return %arg0, %c0_i32, %c0_i32_0, %arg1 : i32, i32, i32, i32
  }
  func.func @transform_2(%arg0: i32, %arg1: i32) -> (i32, i32, i32) {
    %c0_i32 = arith.constant 0 : i32
    %c0_i32_0 = arith.constant 0 : i32
    return %arg0, %c0_i32, %arg1 : i32, i32, i32
  }
  func.func @transform_3(%arg0: i32, %arg1: i32) -> (i32, i32, i32) {
    %c0_i32 = arith.constant 0 : i32
    %c0_i32_0 = arith.constant 0 : i32
    return %arg0, %c0_i32, %arg1 : i32, i32, i32
  }
  func.func @transform_4(%arg0: i32, %arg1: i32) -> (i32, i32) {
    %c0_i32 = arith.constant 0 : i32
    %c0_i32_0 = arith.constant 0 : i32
    %c0_i32_1 = arith.constant 0 : i32
    return %c0_i32, %c0_i32_0 : i32, i32
  }
  func.func @transform_5(%arg0: i32, %arg1: i32) -> (i32, i32) {
    %c0_i32 = arith.constant 0 : i32
    %c0_i32_0 = arith.constant 0 : i32
    %c0_i32_1 = arith.constant 0 : i32
    return %c0_i32, %c0_i32_0 : i32, i32
  }
  func.func @transform_6(%arg0: i32, %arg1: i32) -> (i32, i32) {
    %c0_i32 = arith.constant 0 : i32
    %c0_i32_0 = arith.constant 0 : i32
    %c0_i32_1 = arith.constant 0 : i32
    return %c0_i32, %c0_i32_0 : i32, i32
  }
  func.func @transform_7(%arg0: i32, %arg1: i32) -> (i32, i32) {
    %c0_i32 = arith.constant 0 : i32
    %c0_i32_0 = arith.constant 0 : i32
    %c0_i32_1 = arith.constant 0 : i32
    return %c0_i32, %c0_i32_0 : i32, i32
  }
  func.func @transform_8(%arg0: i32, %arg1: i32) -> (i32, i32) {
    %c0_i32 = arith.constant 0 : i32
    %c0_i32_0 = arith.constant 0 : i32
    %c0_i32_1 = arith.constant 0 : i32
    return %c0_i32, %c0_i32_0 : i32, i32
  }
  func.func @transform_9(%arg0: i32, %arg1: i32) -> (i32, i32) {
    %c0_i32 = arith.constant 0 : i32
    %c0_i32_0 = arith.constant 0 : i32
    %c0_i32_1 = arith.constant 0 : i32
    return %c0_i32, %c0_i32_0 : i32, i32
  }
  func.func @transform_10(%arg0: i32, %arg1: i32) -> (i32, i32) {
    %c0_i32 = arith.constant 0 : i32
    %c0_i32_0 = arith.constant 0 : i32
    %c0_i32_1 = arith.constant 0 : i32
    return %c0_i32, %c0_i32_0 : i32, i32
  }
  func.func @transform_11(%arg0: i32, %arg1: i32) -> (i32, i32) {
    %c0_i32 = arith.constant 0 : i32
    %c0_i32_0 = arith.constant 0 : i32
    %c0_i32_1 = arith.constant 0 : i32
    return %c0_i32, %c0_i32_0 : i32, i32
  }
  func.func @transform_12(%arg0: i32, %arg1: i32) -> (i32, i32, i32) {
    %c0_i32 = arith.constant 0 : i32
    %c0_i32_0 = arith.constant 0 : i32
    return %arg0, %c0_i32, %arg1 : i32, i32, i32
  }
  func.func @transform_13(%arg0: i32, %arg1: i32) -> (i32, i32, i32) {
    %c0_i32 = arith.constant 0 : i32
    %c0_i32_0 = arith.constant 0 : i32
    return %arg0, %c0_i32, %arg1 : i32, i32, i32
  }
}

module attributes {stable_mosaic.version = 11 : i64} {
  func.func @_edge_conv_kernel(%arg0: i32, %arg1: i32, %arg2: memref<1x4x32x16xbf16, #tpu.memory_space<vmem>>, %arg3: memref<1x32x16xbf16, #tpu.memory_space<vmem>>, %arg4: memref<32x32xbf16, #tpu.memory_space<vmem>>, %arg5: memref<32x32xbf16, #tpu.memory_space<vmem>>, %arg6: memref<32x1xf32, #tpu.memory_space<vmem>>, %arg7: memref<1x32x16xf32, #tpu.memory_space<vmem>>) attributes {dimension_semantics = [#tpu.dimension_semantics<parallel>, #tpu.dimension_semantics<parallel>], iteration_bounds = array<i64: 2, 1>, scalar_prefetch = 0 : i64, scratch_operands = 0 : i64, tpu.core_type = #tpu.core_type<tc>, window_params = [{transform_indices = @transform_0, window_bounds = array<i64: 1, 4, 32, 16>}, {transform_indices = @transform_1, window_bounds = array<i64: 1, 32, 16>}, {pipeline_mode = #tpu.pipeline_mode<synchronous>, transform_indices = @transform_2, window_bounds = array<i64: 32, 32>}, {pipeline_mode = #tpu.pipeline_mode<synchronous>, transform_indices = @transform_3, window_bounds = array<i64: 32, 32>}, {pipeline_mode = #tpu.pipeline_mode<synchronous>, transform_indices = @transform_4, window_bounds = array<i64: 32, 1>}, {transform_indices = @transform_5, window_bounds = array<i64: 1, 32, 16>}]} {
    %c0 = arith.constant 0 : index
    %c0_0 = arith.constant 0 : index
    %0 = vector.load %arg4[%c0, %c0_0] : memref<32x32xbf16, #tpu.memory_space<vmem>>, vector<32x32xbf16>
    %c0_1 = arith.constant 0 : index
    %c0_2 = arith.constant 0 : index
    %c0_3 = arith.constant 0 : index
    %c0_4 = arith.constant 0 : index
    %1 = vector.load %arg2[%c0_1, %c0_2, %c0_3, %c0_4] : memref<1x4x32x16xbf16, #tpu.memory_space<vmem>>, vector<1x1x32x16xbf16>
    %2 = vector.shape_cast %1 : vector<1x1x32x16xbf16> to vector<32x16xbf16>
    %cst = arith.constant dense<0.000000e+00> : vector<32x16xf32>
    %3 = tpu.matmul %0, %2, %cst {dimension_numbers = #tpu.dot_dimension_numbers<[1], [0], [0], [1], [0, 0, 1, 1], [], []>} : vector<32x32xbf16>, vector<32x16xbf16>, vector<32x16xf32> -> vector<32x16xf32>
    %c0_5 = arith.constant 0 : index
    %c1 = arith.constant 1 : index
    %c0_6 = arith.constant 0 : index
    %c0_7 = arith.constant 0 : index
    %4 = vector.load %arg2[%c0_5, %c1, %c0_6, %c0_7] : memref<1x4x32x16xbf16, #tpu.memory_space<vmem>>, vector<1x1x32x16xbf16>
    %5 = vector.shape_cast %4 : vector<1x1x32x16xbf16> to vector<32x16xbf16>
    %cst_8 = arith.constant dense<0.000000e+00> : vector<32x16xf32>
    %6 = tpu.matmul %0, %5, %cst_8 {dimension_numbers = #tpu.dot_dimension_numbers<[1], [0], [0], [1], [0, 0, 1, 1], [], []>} : vector<32x32xbf16>, vector<32x16xbf16>, vector<32x16xf32> -> vector<32x16xf32>
    %7 = arith.maximumf %3, %6 : vector<32x16xf32>
    %c0_9 = arith.constant 0 : index
    %c2 = arith.constant 2 : index
    %c0_10 = arith.constant 0 : index
    %c0_11 = arith.constant 0 : index
    %8 = vector.load %arg2[%c0_9, %c2, %c0_10, %c0_11] : memref<1x4x32x16xbf16, #tpu.memory_space<vmem>>, vector<1x1x32x16xbf16>
    %9 = vector.shape_cast %8 : vector<1x1x32x16xbf16> to vector<32x16xbf16>
    %cst_12 = arith.constant dense<0.000000e+00> : vector<32x16xf32>
    %10 = tpu.matmul %0, %9, %cst_12 {dimension_numbers = #tpu.dot_dimension_numbers<[1], [0], [0], [1], [0, 0, 1, 1], [], []>} : vector<32x32xbf16>, vector<32x16xbf16>, vector<32x16xf32> -> vector<32x16xf32>
    %11 = arith.maximumf %7, %10 : vector<32x16xf32>
    %c0_13 = arith.constant 0 : index
    %c3 = arith.constant 3 : index
    %c0_14 = arith.constant 0 : index
    %c0_15 = arith.constant 0 : index
    %12 = vector.load %arg2[%c0_13, %c3, %c0_14, %c0_15] : memref<1x4x32x16xbf16, #tpu.memory_space<vmem>>, vector<1x1x32x16xbf16>
    %13 = vector.shape_cast %12 : vector<1x1x32x16xbf16> to vector<32x16xbf16>
    %cst_16 = arith.constant dense<0.000000e+00> : vector<32x16xf32>
    %14 = tpu.matmul %0, %13, %cst_16 {dimension_numbers = #tpu.dot_dimension_numbers<[1], [0], [0], [1], [0, 0, 1, 1], [], []>} : vector<32x32xbf16>, vector<32x16xbf16>, vector<32x16xf32> -> vector<32x16xf32>
    %15 = arith.maximumf %11, %14 : vector<32x16xf32>
    %c0_17 = arith.constant 0 : index
    %c0_18 = arith.constant 0 : index
    %16 = vector.load %arg5[%c0_17, %c0_18] : memref<32x32xbf16, #tpu.memory_space<vmem>>, vector<32x32xbf16>
    %c0_19 = arith.constant 0 : index
    %c0_20 = arith.constant 0 : index
    %c0_21 = arith.constant 0 : index
    %17 = vector.load %arg3[%c0_19, %c0_20, %c0_21] : memref<1x32x16xbf16, #tpu.memory_space<vmem>>, vector<1x32x16xbf16>
    %18 = vector.shape_cast %17 : vector<1x32x16xbf16> to vector<32x16xbf16>
    %cst_22 = arith.constant dense<0.000000e+00> : vector<32x16xf32>
    %19 = tpu.matmul %16, %18, %cst_22 {dimension_numbers = #tpu.dot_dimension_numbers<[1], [0], [0], [1], [0, 0, 1, 1], [], []>} : vector<32x32xbf16>, vector<32x16xbf16>, vector<32x16xf32> -> vector<32x16xf32>
    %20 = arith.addf %15, %19 : vector<32x16xf32>
    %c0_23 = arith.constant 0 : index
    %c0_24 = arith.constant 0 : index
    %21 = vector.load %arg6[%c0_23, %c0_24] : memref<32x1xf32, #tpu.memory_space<vmem>>, vector<32x1xf32>
    %22 = vector.broadcast %21 : vector<32x1xf32> to vector<32x16xf32>
    %23 = arith.addf %20, %22 : vector<32x16xf32>
    %cst_25 = arith.constant 0.000000e+00 : f32
    %24 = vector.broadcast %cst_25 : f32 to vector<32x16xf32>
    %25 = arith.cmpf ogt, %23, %24 : vector<32x16xf32>
    %cst_26 = arith.constant 2.000000e-01 : f32
    %26 = vector.broadcast %cst_26 : f32 to vector<32x16xf32>
    %27 = arith.mulf %26, %23 : vector<32x16xf32>
    %28 = arith.select %25, %23, %27 : vector<32x16xi1>, vector<32x16xf32>
    %c0_27 = arith.constant 0 : index
    %c0_28 = arith.constant 0 : index
    %c0_29 = arith.constant 0 : index
    %29 = vector.load %arg7[%c0_27, %c0_28, %c0_29] : memref<1x32x16xf32, #tpu.memory_space<vmem>>, vector<1x32x16xf32>
    %30 = vector.shape_cast %29 : vector<1x32x16xf32> to vector<32x16xf32>
    %31 = vector.shape_cast %28 : vector<32x16xf32> to vector<1x32x16xf32>
    tpu.vector_store %arg7[%c0_27, %c0_28, %c0_29], %31 {strides = array<i32>} : memref<1x32x16xf32, #tpu.memory_space<vmem>>, vector<1x32x16xf32>,
    return
  }
  func.func @transform_0(%arg0: i32, %arg1: i32) -> (i32, i32, i32, i32) {
    %c0_i32 = arith.constant 0 : i32
    %c0_i32_0 = arith.constant 0 : i32
    %c0_i32_1 = arith.constant 0 : i32
    return %arg0, %c0_i32, %c0_i32_0, %arg1 : i32, i32, i32, i32
  }
  func.func @transform_1(%arg0: i32, %arg1: i32) -> (i32, i32, i32) {
    %c0_i32 = arith.constant 0 : i32
    %c0_i32_0 = arith.constant 0 : i32
    return %arg0, %c0_i32, %arg1 : i32, i32, i32
  }
  func.func @transform_2(%arg0: i32, %arg1: i32) -> (i32, i32) {
    %c0_i32 = arith.constant 0 : i32
    %c0_i32_0 = arith.constant 0 : i32
    %c0_i32_1 = arith.constant 0 : i32
    return %c0_i32, %c0_i32_0 : i32, i32
  }
  func.func @transform_3(%arg0: i32, %arg1: i32) -> (i32, i32) {
    %c0_i32 = arith.constant 0 : i32
    %c0_i32_0 = arith.constant 0 : i32
    %c0_i32_1 = arith.constant 0 : i32
    return %c0_i32, %c0_i32_0 : i32, i32
  }
  func.func @transform_4(%arg0: i32, %arg1: i32) -> (i32, i32) {
    %c0_i32 = arith.constant 0 : i32
    %c0_i32_0 = arith.constant 0 : i32
    %c0_i32_1 = arith.constant 0 : i32
    return %c0_i32, %c0_i32_0 : i32, i32
  }
  func.func @transform_5(%arg0: i32, %arg1: i32) -> (i32, i32, i32) {
    %c0_i32 = arith.constant 0 : i32
    %c0_i32_0 = arith.constant 0 : i32
    return %arg0, %c0_i32, %arg1 : i32, i32, i32
  }
}

</mosaic_0001>

<bundles_post_ra>
// kernel: model_forward.6
= control target key start
LH: loop header
LB: loop body
LE: loop exit
PB: predicated region body
PF: predicated region fallthrough
CT: control target
= control target key end

     0   :  { %s556_s9 = smov 0   ;;  %s558_s10 = smov 0   ;;  %s605_s0 = inlined_call_operand.vmem [shape: f32[2,16,3], index: 0, kind: input, shape index: {}, may-alias: {0,1}]   ;;  %s606_s1 = inlined_call_operand.vmem [shape: f32[2,16,3], index: 1, kind: input, shape index: {}, may-alias: {0,1}]   ;;  %s607_s2 = inlined_call_operand.vmem [shape: f32[2,16,16], index: 2, kind: output, shape index: {}]  }
   0x1   :  { %s560_s11 = smov 0  }
   0x2 LB: > { %s24_s12 = sadd.s32 1, %s535_s10  ;;  %p459_p0 = scmp.ge.s32.totalorder %s539_s11, 1  ;;  %s539_s11 = sphi %s560_s11, %s12_s11   ;;  %s535_s10 = sphi %s558_s10, %s609_s10   ;;  %s531_s9 = sphi %s556_s9, %s608_s9  }
   0x3   : > { %p26_p1 = scmp.ge.s32.totalorder %s24_s12, 2  ;;  %p143_p2 = scmp.lt.s32.totalorder %s539_s11, 3 }
   0x5   : > { %s611_s12 = smov (%p26_p1, %s24_s12), 0  ;;  %p144_p3 = pnand %p459_p0, %p143_p2 }
   0x6   : > { %p179_p4 = scmp.lt.s32.totalorder (!%p144_p3), %s531_s9, 1  ;;  %vm207_vm0 = vcmask (!%p144_p3), 23552   ;;  %v347_v17 = vlaneseq (!%p144_p3)  ;;  %vm353_vm2 = vcmask (!%p144_p3), 130048  }
   0x7   : > { %147 = sbr.rel (%p144_p3) target bundleno = 297 (0x129), region = 28  ;;  %vm487_vm1 = vmpackc.low (!%p144_p3), %vm207_vm0, %vm207_vm0 }
   0x8   : > { %v348_v19 = vshrl.u32 (!%p144_p3), %v347_v17, 7 }
   0xa   : > { %v349_v23 = vsub.s32 (!%p144_p3), 0, %v348_v19 }
   0xe   : > { %s613_s9 = smov (!%p179_p4, %s531_s9), 1 }
   0xf   : > { %s574_s13 = sshll.u32 %s613_s9, 4 }
  0x10   : > { %s192_s16 = scalar_lea.vmem %s606_s1, %s574_s13  ;;  %s186_s19 = scalar_lea.vmem %s605_s0, %s574_s13 }
  0x11   : > { %v205_v0 = vld [vmem:[%s192_s16] sm:$0xff]  ;;  %v206_v1 = vld [vmem:[%s192_s16 + $0x8] sm:$0xff]  ;;  %s201_s22 = scalar_lea.vmem %s607_s2, %s574_s13 }
  0x12   : > { %v303_v2 = vmul.f32 %v205_v0, %v205_v0  ;;  %v304_v3 = vmul.f32 %v206_v1, %v206_v1  ;;  %v486_v4 = vpack.c.bf16 %v206_v1, %v205_v0  ;;  %v203_v5 = vld [vmem:[%s186_s19] sm:$0xff]  ;;  %v204_v6 = vld [vmem:[%s186_s19 + $0x8] sm:$0xff] }
  0x13   : > { %483 = vmatprep.mubr.msk.f32.mxu0 %vm207_vm0, %v203_v5  ;;  %v295_v7 = vmul.f32 %v203_v5, %v203_v5  ;;  %v296_v8 = vmul.f32 %v204_v6, %v204_v6 }
  0x14   : > { %v305_v9 = vsel %vm207_vm0, %v303_v2, 0.0  ;;  %488 = vmatprep.subr.msk.bf16.mxu0 %vm487_vm1, %v486_v4  ;;  %v308_v11 = vsel %vm207_vm0, %v304_v3, 0.0 }
  0x15   : > { %306 = vadd.xlane.f32.xlu0 %v305_v9  ;;  %491 = vmatpush3.bf16.xpose.msk.msra.mxu0 %vm487_vm1, %v486_v4  ;;  %v297_v10 = vsel %vm207_vm0, %v295_v7, 0.0  ;;  %v300_v12 = vsel %vm207_vm0, %v296_v8, 0.0 }
  0x16   : > { %298 = vadd.xlane.f32.xlu1 %v297_v10 }
  0x19   : > { %309 = vadd.xlane.f32.xlu0 %v308_v11 }
  0x1a   : > { %301 = vadd.xlane.f32.xlu1 %v300_v12 }
  0x1c   : > { %484 = vmatmul.mubr.msk.f32.vlgmr.msra.gmra.mrb[0].mxu0 %vm207_vm0, %v204_v6 }
  0xa2   : > { %v307_v13 = vpop.xlane.xlu0 %306 }
  0xa3   : > { %315 = vxpose.xlu0.b32.start [1/2] (short) (narrow) %v307_v13, 8  ;;  %v299_v18 = vpop.xlane.xlu1 %298 }
  0xa6   : > { %v310_v14 = vpop.xlane.xlu0 %309 }
  0xa7   : > { %316 = vxpose.xlu0.b32.end [2/2] (short) (narrow) %v310_v14, 8  ;;  %v302_v21 = vpop.xlane.xlu1 %301 }
  0xef   : > { %v485_v15 = vpop.f32.mrb[0].mxu0 }
  0xf0   : > { %v286_v16 = vpop.f32.mrb[1].mxu0  ;;  %v312_v20 = vmul.f32 2.0, %v485_v15 }
  0xf1   : > { %v311_v22 = vmul.f32 2.0, %v286_v16 }
  0xf2   : > { %v314_v24 = vsub.f32 %v312_v20, %v302_v21 }
  0xf3   : > { %v313_v26 = vsub.f32 %v311_v22, %v299_v18 }
 0x123   : > { %v331_v25 = vpop.trf.xlu0 }
 0x124   : > { %v350_v27 = vrot.slane %v331_v25, %v349_v23 }
 0x126   : > { %v351_v28 = vsub.f32 %v313_v26, %v350_v27  ;;  %v352_v29 = vsub.f32 %v314_v24, %v350_v27 }
 0x128   : > { %354 = vst.msk [vmem:[%s201_s22] sm:$0xff] %vm353_vm2, %v351_v28  ;;  %355 = vst.msk [vmem:[%s201_s22 + $0x8] sm:$0xff] %vm353_vm2, %v352_v29 }
 0x129 PF: > { %s12_s11 = sadd.s32 1, %s539_s11   ;;  %s608_s9 = smov %s535_s10 }
 0x12a   : > { %p9_p5 = scmp.ge.s32.totalorder %s12_s11, 4   ;;  %s609_s10 = smov %s611_s12 }
 0x12c   :  { %11 = sbr.rel (!%p9_p5) target bundleno = 2 (0x2), region = 61 }

// kernel: model_forward.8
= control target key start
LH: loop header
LB: loop body
LE: loop exit
PB: predicated region body
PF: predicated region fallthrough
CT: control target
= control target key end

     0   :  { %s555_s9 = smov 0   ;;  %s557_s10 = smov 0   ;;  %s606_s0 = inlined_call_operand.vmem [shape: f32[2,16,16], index: 0, kind: input, shape index: {}, may-alias: {0,1}]   ;;  %s607_s1 = inlined_call_operand.vmem [shape: f32[2,16,16], index: 1, kind: input, shape index: {}, may-alias: {0,1}]   ;;  %s608_s2 = inlined_call_operand.vmem [shape: f32[2,16,16], index: 2, kind: output, shape index: {}]  }
   0x1   :  { %s559_s11 = smov 0  }
   0x2 LB: > { %s24_s12 = sadd.s32 1, %s534_s10  ;;  %p458_p0 = scmp.ge.s32.totalorder %s538_s11, 1  ;;  %s538_s11 = sphi %s559_s11, %s12_s11   ;;  %s534_s10 = sphi %s557_s10, %s610_s10   ;;  %s530_s9 = sphi %s555_s9, %s609_s9  }
   0x3   : > { %p26_p1 = scmp.ge.s32.totalorder %s24_s12, 2  ;;  %p143_p2 = scmp.lt.s32.totalorder %s538_s11, 3 }
   0x5   : > { %s612_s12 = smov (%p26_p1, %s24_s12), 0  ;;  %p144_p3 = pnand %p458_p0, %p143_p2 }
   0x6   : > { %p179_p4 = scmp.lt.s32.totalorder (!%p144_p3), %s530_s9, 1  ;;  %vm207_vm0 = vcmask (!%p144_p3), 130048   ;;  %v347_v17 = vlaneseq (!%p144_p3) }
   0x7   : > { %147 = sbr.rel (%p144_p3) target bundleno = 297 (0x129), region = 28  ;;  %vm486_vm1 = vmpackc.low (!%p144_p3), %vm207_vm0, %vm207_vm0 }
   0x8   : > { %v348_v19 = vshrl.u32 (!%p144_p3), %v347_v17, 7 }
   0xa   : > { %v349_v23 = vsub.s32 (!%p144_p3), 0, %v348_v19 }
   0xe   : > { %s614_s9 = smov (!%p179_p4, %s530_s9), 1 }
   0xf   : > { %s573_s13 = sshll.u32 %s614_s9, 4 }
  0x10   : > { %s192_s16 = scalar_lea.vmem %s607_s1, %s573_s13  ;;  %s186_s19 = scalar_lea.vmem %s606_s0, %s573_s13 }
  0x11   : > { %v205_v0 = vld [vmem:[%s192_s16] sm:$0xff]  ;;  %v206_v1 = vld [vmem:[%s192_s16 + $0x8] sm:$0xff]  ;;  %s201_s22 = scalar_lea.vmem %s608_s2, %s573_s13 }
  0x12   : > { %v303_v2 = vmul.f32 %v205_v0, %v205_v0  ;;  %v304_v3 = vmul.f32 %v206_v1, %v206_v1  ;;  %v485_v4 = vpack.c.bf16 %v206_v1, %v205_v0  ;;  %v203_v5 = vld [vmem:[%s186_s19] sm:$0xff]  ;;  %v204_v6 = vld [vmem:[%s186_s19 + $0x8] sm:$0xff] }
  0x13   : > { %482 = vmatprep.mubr.msk.f32.mxu0 %vm207_vm0, %v203_v5  ;;  %v295_v7 = vmul.f32 %v203_v5, %v203_v5  ;;  %v296_v8 = vmul.f32 %v204_v6, %v204_v6 }
  0x14   : > { %v305_v9 = vsel %vm207_vm0, %v303_v2, 0.0  ;;  %487 = vmatprep.subr.msk.bf16.mxu0 %vm486_vm1, %v485_v4  ;;  %v308_v11 = vsel %vm207_vm0, %v304_v3, 0.0 }
  0x15   : > { %306 = vadd.xlane.f32.xlu0 %v305_v9  ;;  %490 = vmatpush3.bf16.xpose.msk.msra.mxu0 %vm486_vm1, %v485_v4  ;;  %v297_v10 = vsel %vm207_vm0, %v295_v7, 0.0  ;;  %v300_v12 = vsel %vm207_vm0, %v296_v8, 0.0 }
  0x16   : > { %298 = vadd.xlane.f32.xlu1 %v297_v10 }
  0x19   : > { %309 = vadd.xlane.f32.xlu0 %v308_v11 }
  0x1a   : > { %301 = vadd.xlane.f32.xlu1 %v300_v12 }
  0x1c   : > { %483 = vmatmul.mubr.msk.f32.vlgmr.msra.gmra.mrb[0].mxu0 %vm207_vm0, %v204_v6 }
  0xa2   : > { %v307_v13 = vpop.xlane.xlu0 %306 }
  0xa3   : > { %315 = vxpose.xlu0.b32.start [1/2] (short) (narrow) %v307_v13, 8  ;;  %v299_v18 = vpop.xlane.xlu1 %298 }
  0xa6   : > { %v310_v14 = vpop.xlane.xlu0 %309 }
  0xa7   : > { %316 = vxpose.xlu0.b32.end [2/2] (short) (narrow) %v310_v14, 8  ;;  %v302_v21 = vpop.xlane.xlu1 %301 }
  0xef   : > { %v484_v15 = vpop.f32.mrb[0].mxu0 }
  0xf0   : > { %v286_v16 = vpop.f32.mrb[1].mxu0  ;;  %v312_v20 = vmul.f32 2.0, %v484_v15 }
  0xf1   : > { %v311_v22 = vmul.f32 2.0, %v286_v16 }
  0xf2   : > { %v314_v24 = vsub.f32 %v312_v20, %v302_v21 }
  0xf3   : > { %v313_v26 = vsub.f32 %v311_v22, %v299_v18 }
 0x123   : > { %v331_v25 = vpop.trf.xlu0 }
 0x124   : > { %v350_v27 = vrot.slane %v331_v25, %v349_v23 }
 0x126   : > { %v351_v28 = vsub.f32 %v313_v26, %v350_v27  ;;  %v352_v29 = vsub.f32 %v314_v24, %v350_v27 }
 0x128   : > { %353 = vst.msk [vmem:[%s201_s22] sm:$0xff] %vm207_vm0, %v351_v28  ;;  %354 = vst.msk [vmem:[%s201_s22 + $0x8] sm:$0xff] %vm207_vm0, %v352_v29 }
 0x129 PF: > { %s12_s11 = sadd.s32 1, %s538_s11   ;;  %s609_s9 = smov %s534_s10 }
 0x12a   : > { %p9_p5 = scmp.ge.s32.totalorder %s12_s11, 4   ;;  %s610_s10 = smov %s612_s12 }
 0x12c   :  { %11 = sbr.rel (!%p9_p5) target bundleno = 2 (0x2), region = 61 }

// kernel: model_forward.7
= control target key start
LH: loop header
LB: loop body
LE: loop exit
PB: predicated region body
PF: predicated region fallthrough
CT: control target
= control target key end

     0   :  { %s820_s18 = smov 0   ;;  %s822_s19 = smov 0   ;;  %s883_s0 = inlined_call_operand.vmem [shape: bf16[2,4,3,16], index: 0, kind: input, shape index: {}]   ;;  %s884_s1 = inlined_call_operand.vmem [shape: bf16[2,3,16], index: 1, kind: input, shape index: {}]   ;;  %s885_s2 = inlined_call_operand.vmem [shape: bf16[16,3], index: 2, kind: input, shape index: {}]   ;;  %s886_s3 = inlined_call_operand.vmem [shape: bf16[16,3], index: 3, kind: input, shape index: {}]   ;;  %s887_s4 = inlined_call_operand.vmem [shape: f32[16,1], index: 4, kind: input, shape index: {}]   ;;  %s888_s5 = inlined_call_operand.vmem [shape: f32[2,16,16], index: 5, kind: output, shape index: {}]  }
   0x1   :  { %s824_s20 = smov 0  }
   0x2 LB: > { %s27_s21 = sadd.s32 1, %s780_s19  ;;  %p671_p0 = scmp.ge.s32.totalorder %s784_s20, 1  ;;  %s784_s20 = sphi %s824_s20, %s15_s20   ;;  %s780_s19 = sphi %s822_s19, %s890_s19   ;;  %s776_s18 = sphi %s820_s18, %s889_s18  }
   0x3   : > { %p29_p1 = scmp.ge.s32.totalorder %s27_s21, 2  ;;  %p220_p2 = scmp.lt.s32.totalorder %s784_s20, 3 }
   0x5   : > { %s892_s21 = smov (%p29_p1, %s27_s21), 0  ;;  %p221_p3 = pnand %p671_p0, %p220_p2 }
   0x6   : > { %p261_p4 = scmp.lt.s32.totalorder (!%p221_p3), %s776_s18, 1  ;;  %vm297_vm0 = vcmask (!%p221_p3), 1040384   ;;  %vm298_vm1 = vcmask (!%p221_p3), 1041408   ;;  %v786_v0 = vmov (!%p221_p3), 0.0   ;;  %v787_v1 = vmov (!%p221_p3), 65535   ;;  %v546_v3 = vld [vmem:[%s887_s4] sm:$0xff] (!%p221_p3) }
   0x7   : > { %224 = sbr.rel (%p221_p3) target bundleno = 261 (0x105), region = 40  ;;  %701 = vmatprep.subr.bf16.mxu0 (!%p221_p3), %v786_v0  ;;  %707 = vmatprep.subr.bf16.mxu1 (!%p221_p3), %v786_v0  ;;  %v299_v2 = vsel (!%p221_p3), %vm297_vm0, 4294967295, %v787_v1  ;;  %vm788_vm2 = vmmov (!%p221_p3), 0   ;;  %v789_v5 = vmov (!%p221_p3), 0   ;;  %v760_v12 = vld [vmem:[%s885_s2] sm:$0xff] (!%p221_p3)   ;;  %v547_v13 = vld [vmem:[%s887_s4 + $0x8] sm:$0xff] (!%p221_p3) }
   0x8   : > { %703 = vmatprep.mubr.msk.bf16.mxu0 (!%p221_p3), %vm788_vm2, %v786_v0  ;;  %709 = vmatprep.mubr.msk.bf16.mxu1 (!%p221_p3), %vm788_vm2, %v786_v0  ;;  %v300_v4 = vsel (!%p221_p3), %vm298_vm1, %v299_v2, 0  ;;  %vm293_vm3 = vcmask (!%p221_p3), 23552   ;;  %v761_v18 = vld [vmem:[%s886_s3] sm:$0xff] (!%p221_p3)   ;;  %vm566_vm5 = vcmask (!%p221_p3), 130048  }
   0x9   : > { %759 = vset.pattern.permute.xlu0 (!%p221_p3), %v789_v5 }
   0xa   : > { %550 = vperm.xlu0 (!%p221_p3), %759, %v546_v3  }
   0xe   : > { %s894_s18 = smov (!%p261_p4, %s776_s18), 1  ;;  %555 = vperm.xlu0 %759, %v547_v13  }
   0xf   : > { %s689_s24 = sshll.u32 %s894_s18, 3  ;;  %s674_s30 = sshll.u32 %s894_s18, 1 }
  0x10   : > { %s268_s27 = scalar_lea.vmem %s883_s0, %s689_s24  ;;  %s275_s10 = scalar_lea.vmem %s884_s1, %s674_s30 }
  0x11   : > { %v287_v6 = vld [vmem:[%s268_s27] sm:$0x3]  ;;  %v679_v7 = vld [vmem:[%s268_s27 + $0x2] sm:$0x3]  ;;  %v681_v8 = vld [vmem:[%s268_s27 + $0x4] sm:$0x3] }
  0x12   : > { %v302_v9 = vand.u32 %v300_v4, %v287_v6  ;;  %v348_v10 = vand.u32 %v679_v7, %v300_v4  ;;  %v683_v11 = vld [vmem:[%s268_s27 + $0x6] sm:$0x3]  ;;  %v396_v14 = vand.u32 %v681_v8, %v300_v4  ;;  %v491_v16 = vld [vmem:[%s275_s10] sm:$0x3]  ;;  %s690_s13 = sshll.u32 %s894_s18, 4 }
  0x13   : > { %v444_v15 = vand.u32 %v683_v11, %v300_v4  ;;  %v501_v17 = vand.u32 %v491_v16, %v300_v4  ;;  %s283_s16 = scalar_lea.vmem %s888_s5, %s690_s13 }
  0x14   : > { %702 = vmatpush3.bf16.msra.mxu0 %v302_v9  ;;  %708 = vmatpush3.bf16.msra.mxu1 %v348_v10 }
  0x15   : > { %713 = vmatprep.subr.bf16.mxu0 %v786_v0  ;;  %719 = vmatprep.subr.bf16.mxu1 %v786_v0 }
  0x17   : > { %704 = vmatmul.mubr.msk.bf16.vlgmr.msra.gmra.mrb[0].mxu0 %vm293_vm3, %v760_v12  ;;  %710 = vmatmul.mubr.msk.bf16.vlgmr.msra.gmra.mrb[0].mxu1 %vm293_vm3, %v760_v12 }
  0x18   : > { %714 = vmatpush3.bf16.msra.mxu0 %v396_v14  ;;  %715 = vmatprep.mubr.msk.bf16.mxu0 %vm788_vm2, %v786_v0 }
  0x19   : > { %720 = vmatpush3.bf16.msra.mxu1 %v444_v15  ;;  %725 = vmatprep.subr.bf16.mxu0 %v786_v0 }
  0x1a   : > { %721 = vmatprep.mubr.msk.bf16.mxu1 %vm788_vm2, %v786_v0 }
  0x1f   : > { %716 = vmatmul.mubr.msk.bf16.vlgmr.msra.gmra.mrb[4].mxu0 %vm293_vm3, %v760_v12  ;;  %722 = vmatmul.mubr.msk.bf16.vlgmr.msra.gmra.mrb[4].mxu1 %vm293_vm3, %v760_v12 }
  0x20   : > { %726 = vmatpush3.bf16.msra.mxu0 %v501_v17  ;;  %727 = vmatprep.mubr.msk.bf16.mxu0 %vm788_vm2, %v786_v0 }
  0x27   : > { %728 = vmatmul.mubr.msk.bf16.vlgmr.msra.gmra.mrb[8].mxu0 %vm293_vm3, %v761_v18 }
  0x89   : > { %v551_v41 = vpop.permute.xlu0 %550 }
  0x8d   : > { %v556_v49 = vpop.permute.xlu0 %555 }
  0xea   : > { %v338_v19 = vpop.f32.mrb[0].mxu0  ;;  %v384_v20 = vpop.f32.mrb[0].mxu1 }
  0xeb   : > { %v391_v21 = vmax.f32 %v338_v19, %v384_v20  ;;  %v705_v22 = vpop.f32.mrb[1].mxu0  ;;  %v711_v23 = vpop.f32.mrb[1].mxu1 }
  0xec   : > { %v341_v24 = vpop.f32.mrb[2].mxu0  ;;  %v387_v25 = vpop.f32.mrb[2].mxu1 }
  0xed   : > { %v392_v26 = vmax.f32 %v341_v24, %v387_v25  ;;  %v706_v27 = vpop.f32.mrb[3].mxu0  ;;  %v712_v28 = vpop.f32.mrb[3].mxu1 }
  0xf2   : > { %v432_v29 = vpop.f32.mrb[4].mxu0  ;;  %v480_v30 = vpop.f32.mrb[4].mxu1 }
  0xf3   : > { %v439_v31 = vmax.f32 %v391_v21, %v432_v29  ;;  %v717_v32 = vpop.f32.mrb[5].mxu0  ;;  %v723_v33 = vpop.f32.mrb[5].mxu1 }
  0xf4   : > { %v435_v34 = vpop.f32.mrb[6].mxu0  ;;  %v483_v35 = vpop.f32.mrb[6].mxu1 }
  0xf5   : > { %v440_v36 = vmax.f32 %v392_v26, %v435_v34  ;;  %v487_v37 = vmax.f32 %v439_v31, %v480_v30  ;;  %v718_v38 = vpop.f32.mrb[7].mxu0  ;;  %v724_v39 = vpop.f32.mrb[7].mxu1 }
  0xf7   : > { %v488_v40 = vmax.f32 %v440_v36, %v483_v35 }
  0xfa   : > { %v537_v42 = vpop.f32.mrb[8].mxu0 }
  0xfb   : > { %v544_v43 = vadd.f32 %v537_v42, %v487_v37  ;;  %v729_v44 = vpop.f32.mrb[9].mxu0 }
  0xfc   : > { %v540_v45 = vpop.f32.mrb[10].mxu0 }
  0xfd   : > { %v558_v46 = vadd.f32 %v551_v41, %v544_v43  ;;  %v545_v47 = vadd.f32 %v540_v45, %v488_v40  ;;  %v730_v48 = vpop.f32.mrb[11].mxu0 }
  0xff   : > { %vm560_vm4 = vcmp.gt.f32.partialorder %v558_v46, 0.0  ;;  %v562_v50 = vmul.f32 0.2, %v558_v46  ;;  %v559_v51 = vadd.f32 %v556_v49, %v545_v47 }
 0x101   : > { %v564_v52 = vsel %vm560_vm4, %v558_v46, %v562_v50  ;;  %vm561_vm6 = vcmp.gt.f32.partialorder %v559_v51, 0.0  ;;  %v563_v53 = vmul.f32 0.2, %v559_v51 }
 0x102   : > { %567 = vst.msk [vmem:[%s283_s16] sm:$0xff] %vm566_vm5, %v564_v52 }
 0x103   : > { %v565_v54 = vsel %vm561_vm6, %v559_v51, %v563_v53 }
 0x104   : > { %568 = vst.msk [vmem:[%s283_s16 + $0x8] sm:$0xff] %vm566_vm5, %v565_v54 }
 0x105 PF: > { %s15_s20 = sadd.s32 1, %s784_s20   ;;  %s889_s18 = smov %s780_s19 }
 0x106   : > { %p12_p5 = scmp.ge.s32.totalorder %s15_s20, 4   ;;  %s890_s19 = smov %s892_s21 }
 0x108   :  { %14 = sbr.rel (!%p12_p5) target bundleno = 2 (0x2), region = 76 }

// kernel: model_forward.10
= control target key start
LH: loop header
LB: loop body
LE: loop exit
PB: predicated region body
PF: predicated region fallthrough
CT: control target
= control target key end

     0   :  { %s556_s9 = smov 0   ;;  %s558_s10 = smov 0   ;;  %s605_s0 = inlined_call_operand.vmem [shape: f32[2,16,32], index: 0, kind: input, shape index: {}, may-alias: {0,1}]   ;;  %s606_s1 = inlined_call_operand.vmem [shape: f32[2,16,32], index: 1, kind: input, shape index: {}, may-alias: {0,1}]   ;;  %s607_s2 = inlined_call_operand.vmem [shape: f32[2,16,16], index: 2, kind: output, shape index: {}]  }
   0x1   :  { %s560_s11 = smov 0  }
   0x2 LB: > { %s24_s12 = sadd.s32 1, %s535_s10  ;;  %p459_p0 = scmp.ge.s32.totalorder %s539_s11, 1  ;;  %s539_s11 = sphi %s560_s11, %s12_s11   ;;  %s535_s10 = sphi %s558_s10, %s609_s10   ;;  %s531_s9 = sphi %s556_s9, %s608_s9  }
   0x3   : > { %p26_p1 = scmp.ge.s32.totalorder %s24_s12, 2  ;;  %p143_p2 = scmp.lt.s32.totalorder %s539_s11, 3 }
   0x5   : > { %s611_s12 = smov (%p26_p1, %s24_s12), 0  ;;  %p144_p3 = pnand %p459_p0, %p143_p2 }
   0x6   : > { %p179_p4 = scmp.lt.s32.totalorder (!%p144_p3), %s531_s9, 1  ;;  %vm207_vm0 = vcmask (!%p144_p3), 261120   ;;  %v347_v17 = vlaneseq (!%p144_p3)  ;;  %vm353_vm2 = vcmask (!%p144_p3), 130048  }
   0x7   : > { %147 = sbr.rel (%p144_p3) target bundleno = 297 (0x129), region = 28  ;;  %vm487_vm1 = vmpackc.low (!%p144_p3), %vm207_vm0, %vm207_vm0 }
   0x8   : > { %v348_v19 = vshrl.u32 (!%p144_p3), %v347_v17, 7 }
   0xa   : > { %v349_v23 = vsub.s32 (!%p144_p3), 0, %v348_v19 }
   0xe   : > { %s613_s9 = smov (!%p179_p4, %s531_s9), 1 }
   0xf   : > { %s574_s13 = sshll.u32 %s613_s9, 4 }
  0x10   : > { %s192_s16 = scalar_lea.vmem %s606_s1, %s574_s13  ;;  %s186_s19 = scalar_lea.vmem %s605_s0, %s574_s13 }
  0x11   : > { %v205_v0 = vld [vmem:[%s192_s16] sm:$0xff]  ;;  %v206_v1 = vld [vmem:[%s192_s16 + $0x8] sm:$0xff]  ;;  %s201_s22 = scalar_lea.vmem %s607_s2, %s574_s13 }
  0x12   : > { %v303_v2 = vmul.f32 %v205_v0, %v205_v0  ;;  %v304_v3 = vmul.f32 %v206_v1, %v206_v1  ;;  %v486_v4 = vpack.c.bf16 %v206_v1, %v205_v0  ;;  %v203_v5 = vld [vmem:[%s186_s19] sm:$0xff]  ;;  %v204_v6 = vld [vmem:[%s186_s19 + $0x8] sm:$0xff] }
  0x13   : > { %483 = vmatprep.mubr.msk.f32.mxu0 %vm207_vm0, %v203_v5  ;;  %v295_v7 = vmul.f32 %v203_v5, %v203_v5  ;;  %v296_v8 = vmul.f32 %v204_v6, %v204_v6 }
  0x14   : > { %v305_v9 = vsel %vm207_vm0, %v303_v2, 0.0  ;;  %488 = vmatprep.subr.msk.bf16.mxu0 %vm487_vm1, %v486_v4  ;;  %v308_v11 = vsel %vm207_vm0, %v304_v3, 0.0 }
  0x15   : > { %306 = vadd.xlane.f32.xlu0 %v305_v9  ;;  %491 = vmatpush3.bf16.xpose.msk.msra.mxu0 %vm487_vm1, %v486_v4  ;;  %v297_v10 = vsel %vm207_vm0, %v295_v7, 0.0  ;;  %v300_v12 = vsel %vm207_vm0, %v296_v8, 0.0 }
  0x16   : > { %298 = vadd.xlane.f32.xlu1 %v297_v10 }
  0x19   : > { %309 = vadd.xlane.f32.xlu0 %v308_v11 }
  0x1a   : > { %301 = vadd.xlane.f32.xlu1 %v300_v12 }
  0x1c   : > { %484 = vmatmul.mubr.msk.f32.vlgmr.msra.gmra.mrb[0].mxu0 %vm207_vm0, %v204_v6 }
  0xa2   : > { %v307_v13 = vpop.xlane.xlu0 %306 }
  0xa3   : > { %315 = vxpose.xlu0.b32.start [1/2] (short) (narrow) %v307_v13, 8  ;;  %v299_v18 = vpop.xlane.xlu1 %298 }
  0xa6   : > { %v310_v14 = vpop.xlane.xlu0 %309 }
  0xa7   : > { %316 = vxpose.xlu0.b32.end [2/2] (short) (narrow) %v310_v14, 8  ;;  %v302_v21 = vpop.xlane.xlu1 %301 }
  0xef   : > { %v485_v15 = vpop.f32.mrb[0].mxu0 }
  0xf0   : > { %v286_v16 = vpop.f32.mrb[1].mxu0  ;;  %v312_v20 = vmul.f32 2.0, %v485_v15 }
  0xf1   : > { %v311_v22 = vmul.f32 2.0, %v286_v16 }
  0xf2   : > { %v314_v24 = vsub.f32 %v312_v20, %v302_v21 }
  0xf3   : > { %v313_v26 = vsub.f32 %v311_v22, %v299_v18 }
 0x123   : > { %v331_v25 = vpop.trf.xlu0 }
 0x124   : > { %v350_v27 = vrot.slane %v331_v25, %v349_v23 }
 0x126   : > { %v351_v28 = vsub.f32 %v313_v26, %v350_v27  ;;  %v352_v29 = vsub.f32 %v314_v24, %v350_v27 }
 0x128   : > { %354 = vst.msk [vmem:[%s201_s22] sm:$0xff] %vm353_vm2, %v351_v28  ;;  %355 = vst.msk [vmem:[%s201_s22 + $0x8] sm:$0xff] %vm353_vm2, %v352_v29 }
 0x129 PF: > { %s12_s11 = sadd.s32 1, %s539_s11   ;;  %s608_s9 = smov %s535_s10 }
 0x12a   : > { %p9_p5 = scmp.ge.s32.totalorder %s12_s11, 4   ;;  %s609_s10 = smov %s611_s12 }
 0x12c   :  { %11 = sbr.rel (!%p9_p5) target bundleno = 2 (0x2), region = 61 }

// kernel: model_forward.9
= control target key start
LH: loop header
LB: loop body
LE: loop exit
PB: predicated region body
PF: predicated region fallthrough
CT: control target
= control target key end

     0   :  { %s2195_s25 = smov 0   ;;  %s2197_s26 = smov 0   ;;  %s2412_s0 = inlined_call_operand.vmem [shape: bf16[2,4,3,16], index: 0, kind: input, shape index: {}]   ;;  %s2413_s1 = inlined_call_operand.vmem [shape: bf16[2,4,16,16], index: 1, kind: input, shape index: {}]   ;;  %s2414_s2 = inlined_call_operand.vmem [shape: bf16[2,3,16], index: 2, kind: input, shape index: {}]   ;;  %s2415_s3 = inlined_call_operand.vmem [shape: bf16[2,16,16], index: 3, kind: input, shape index: {}]   ;;  %s2416_s4 = inlined_call_operand.vmem [shape: bf16[32,3], index: 4, kind: input, shape index: {}]   ;;  %s2417_s5 = inlined_call_operand.vmem [shape: bf16[32,16], index: 5, kind: input, shape index: {}]   ;;  %s2418_s6 = inlined_call_operand.vmem [shape: bf16[32,3], index: 6, kind: input, shape index: {}]   ;;  %s2419_s7 = inlined_call_operand.vmem [shape: bf16[32,16], index: 7, kind: input, shape index: {}]   ;;  %s2420_s8 = inlined_call_operand.vmem [shape: f32[32,1], index: 8, kind: input, shape index: {}]   ;;  %s2421_s9 = inlined_call_operand.vmem [shape: bf16[32,16], index: 9, kind: input, shape index: {}]   ;;  %s2422_s10 = inlined_call_operand.vmem [shape: bf16[32,16], index: 10, kind: input, shape index: {}]   ;;  %s2423_s11 = inlined_call_operand.vmem [shape: f32[32,1], index: 11, kind: input, shape index: {}]   ;;  %s2424_s12 = inlined_call_operand.vmem [shape: f32[2,32,16], index: 12, kind: output, shape index: {0}]   ;;  %s2425_s13 = inlined_call_operand.vmem [shape: f32[2,32,16], index: 13, kind: output, shape index: {1}]  }
   0x1   :  { %s2199_s27 = smov 0  }
   0x2 LB: > { %s36_s28 = sadd.s32 1, %s2117_s26  ;;  %p1820_p0 = scmp.ge.s32.totalorder %s2121_s27, 1  ;;  %s2121_s27 = sphi %s2199_s27, %s24_s27   ;;  %s2117_s26 = sphi %s2197_s26, %s2427_s26   ;;  %s2113_s25 = sphi %s2195_s25, %s2426_s25  }
   0x3   : > { %p38_p1 = scmp.ge.s32.totalorder %s36_s28, 2  ;;  %p455_p2 = scmp.lt.s32.totalorder %s2121_s27, 3 }
   0x5   : > { %s2429_s28 = smov (%p38_p1, %s36_s28), 0  ;;  %p456_p3 = pnand %p1820_p0, %p455_p2 }
   0x6   : > { %p536_p4 = scmp.lt.s32.totalorder (!%p456_p3), %s2113_s25, 1  ;;  %v2216_v0 = vld [vmem:[%s2417_s5] sm:$0xff] (!%p456_p3)   ;;  %vm615_vm0 = vcmask (!%p456_p3), 130048   ;;  %vm688_vm1 = vcmask (!%p456_p3), 1040384   ;;  %vm689_vm2 = vcmask (!%p456_p3), 1041408   ;;  %v2123_v2 = vmov (!%p456_p3), 65535  }
   0x7   : > { %459 = sbr.rel (%p456_p3) target bundleno = 313 (0x139), region = 68  ;;  %v2221_v1 = vld [vmem:[%s2421_s9] sm:$0xff] (!%p456_p3)   ;;  %1942 = vmatprep.mubr.msk.bf16.mxu0 (!%p456_p3), %vm615_vm0, %v2216_v0  ;;  %v690_v3 = vsel (!%p456_p3), %vm688_vm1, 4294967295, %v2123_v2  ;;  %v2250_v6 = vld [vmem:[%s2417_s5 + $0x8] sm:$0xff] (!%p456_p3)   ;;  %vm681_vm3 = vcmask (!%p456_p3), 23552   ;;  %v2124_v14 = vmov (!%p456_p3), 0  }
   0x8   : > { %1954 = vmatprep.mubr.msk.bf16.mxu1 (!%p456_p3), %vm615_vm0, %v2221_v1  ;;  %v2244_v4 = vsel (!%p456_p3), %vm689_vm2, %v690_v3, 0  ;;  %v2255_v7 = vld [vmem:[%s2421_s9 + $0x8] sm:$0xff] (!%p456_p3)   ;;  %v2264_v12 = vld [vmem:[%s2416_s4] sm:$0xff] (!%p456_p3)   ;;  %2080 = vset.pattern.permute.xlu0 (!%p456_p3), %v2124_v14  ;;  %v1476_v18 = vld [vmem:[%s2420_s8 + $0x10] sm:$0xff] (!%p456_p3) }
   0x9   : > { %2081 = vset.pattern.permute.xlu1 (!%p456_p3), %v2124_v14  ;;  %v1474_v16 = vld [vmem:[%s2420_s8] sm:$0xff] (!%p456_p3)  ;;  %v2089_v17 = vld [vmem:[%s2416_s4 + $0x8] sm:$0xff] (!%p456_p3)   ;;  %v1477_v20 = vld [vmem:[%s2420_s8 + $0x18] sm:$0xff] (!%p456_p3) }
   0xa   : > { %1480 = vperm.xlu0 (!%p456_p3), %2080, %v1474_v16   ;;  %v1475_v19 = vld [vmem:[%s2420_s8 + $0x8] sm:$0xff] (!%p456_p3)  ;;  %1490 = vperm.xlu1 (!%p456_p3), %2081, %v1476_v18   ;;  %v1591_v21 = vld [vmem:[%s2423_s11] sm:$0xff] (!%p456_p3)  ;;  %v1593_v26 = vld [vmem:[%s2423_s11 + $0x10] sm:$0xff] (!%p456_p3) }
   0xb   : > { %v1592_v22 = vld [vmem:[%s2423_s11 + $0x8] sm:$0xff] (!%p456_p3)  ;;  %v1594_v27 = vld [vmem:[%s2423_s11 + $0x18] sm:$0xff] (!%p456_p3)  ;;  %v2093_v33 = vld [vmem:[%s2418_s6] sm:$0xff] (!%p456_p3)  }
   0xc   : > { %v2094_v34 = vld [vmem:[%s2422_s10] sm:$0xff] (!%p456_p3)   ;;  %v2095_v35 = vld [vmem:[%s2418_s6 + $0x8] sm:$0xff] (!%p456_p3)  }
   0xd   : > { %v2096_v36 = vld [vmem:[%s2422_s10 + $0x8] sm:$0xff] (!%p456_p3)   ;;  %v2097_v37 = vld [vmem:[%s2419_s7] sm:$0xff] (!%p456_p3)  }
   0xe   : > { %s2431_s25 = smov (!%p536_p4, %s2113_s25), 1  ;;  %1485 = vperm.xlu0 %2080, %v1475_v19   ;;  %1495 = vperm.xlu1 %2081, %v1477_v20   ;;  %v2098_v38 = vld [vmem:[%s2419_s7 + $0x8] sm:$0xff]  }
   0xf   : > { %s2230_s16 = sshll.u32 %s2431_s25, 5  ;;  %s1890_s17 = sshll.u32 %s2431_s25, 3 }
  0x10   : > { %s2237_s20 = scalar_lea.vmem %s2413_s1, %s2230_s16  ;;  %s2242_s23 = scalar_lea.vmem %s2412_s0, %s1890_s17 }
  0x11   : > { %v2082_v5 = vld [vmem:[%s2237_s20] sm:$0xff]   ;;  %v2087_v10 = vld [vmem:[%s2237_s20 + $0x8] sm:$0xff]   ;;  %s2270_s22 = scalar_lea.vmem %s2415_s3, %s1890_s17  ;;  %v2090_v15 = vld [vmem:[%s2237_s20 + $0x10] sm:$0xff]   ;;  %s574_s14 = scalar_lea.vmem %s2424_s12, %s2230_s16 }
  0x12   : > { %v596_v8 = vld [vmem:[%s2242_s23] sm:$0x3]  ;;  %1940 = vmatprep.subr.bf16.mxu0 %v2082_v5  ;;  %1952 = vmatprep.subr.bf16.mxu1 %v2082_v5  ;;  %v1845_v11 = vld [vmem:[%s2242_s23 + $0x2] sm:$0x3]  ;;  %v1855_v23 = vld [vmem:[%s2242_s23 + $0x4] sm:$0x3] }
  0x13   : > { %v693_v9 = vand.u32 %v2244_v4, %v596_v8  ;;  %1941 = vmatpush3.bf16.msra.mxu0 %v2082_v5  ;;  %1953 = vmatpush3.bf16.msra.mxu1 %v2082_v5  ;;  %v870_v13 = vand.u32 %v1845_v11, %v2244_v4  ;;  %v1039_v24 = vand.u32 %v1855_v23, %v2244_v4  ;;  %v2091_v25 = vld [vmem:[%s2237_s20 + $0x18] sm:$0xff]   ;;  %v1865_v28 = vld [vmem:[%s2242_s23 + $0x6] sm:$0x3]  ;;  %s1825_s20 = sshll.u32 %s2431_s25, 1 }
  0x14   : > { %1958 = vmatprep.subr.bf16.mxu1 %v2087_v10  ;;  %1597 = vperm.xlu0 %2080, %v1591_v21   ;;  %v1208_v29 = vand.u32 %v1865_v28, %v2244_v4  ;;  %s558_s24 = scalar_lea.vmem %s2414_s2, %s1825_s20  ;;  %v2092_v30 = vld [vmem:[%s2270_s22] sm:$0xff]   ;;  %s582_s22 = scalar_lea.vmem %s2425_s13, %s2230_s16 }
  0x15   : > { %1946 = vmatprep.subr.bf16.mxu0 %v693_v9  ;;  %1602 = vperm.xlu1 %2081, %v1592_v22   ;;  %v1316_v31 = vld [vmem:[%s558_s24] sm:$0x3] }
  0x16   : > { %1943 = vmatmul.mubr.msk.bf16.vlgmr.msra.gmra.mrb[0].mxu0 %vm615_vm0, %v2250_v6  ;;  %1955 = vmatmul.mubr.msk.bf16.vlgmr.msra.gmra.mrb[0].mxu1 %vm615_vm0, %v2255_v7  ;;  %v1340_v32 = vand.u32 %v1316_v31, %v2244_v4 }
  0x17   : > { %1947 = vmatpush3.bf16.msra.mxu0 %v693_v9  ;;  %1959 = vmatpush3.bf16.msra.mxu1 %v2087_v10 }
  0x18   : > { %1960 = vmatprep.mubr.msk.bf16.mxu1 %vm615_vm0, %v2216_v0  ;;  %1948 = vmatprep.mubr.msk.bf16.mxu0 %vm681_vm3, %v2264_v12 }
  0x19   : > { %1970 = vmatprep.subr.bf16.mxu0 %v2087_v10  ;;  %1964 = vmatprep.subr.bf16.mxu1 %v870_v13 }
  0x1a   : > { %1607 = vperm.xlu0 %2080, %v1593_v26   ;;  %1612 = vperm.xlu1 %2081, %v1594_v27  }
  0x1e   : > { %1961 = vmatmul.mubr.msk.bf16.vlgmr.msra.gmra.mrb[4].mxu1 %vm615_vm0, %v2250_v6 }
  0x1f   : > { %1965 = vmatpush3.bf16.msra.mxu1 %v870_v13  ;;  %1966 = vmatprep.mubr.msk.bf16.mxu1 %vm681_vm3, %v2264_v12 }
  0x20   : > { %1988 = vmatprep.subr.bf16.mxu1 %v2090_v15 }
  0x22   : > { %1949 = vmatmul.mubr.msk.bf16.vlgmr.msra.gmra.mrb[0].mxu0 %vm681_vm3, %v2089_v17 }
  0x23   : > { %1971 = vmatpush3.bf16.msra.mxu0 %v2087_v10  ;;  %1972 = vmatprep.mubr.msk.bf16.mxu0 %vm615_vm0, %v2221_v1 }
  0x24   : > { %1976 = vmatprep.subr.bf16.mxu0 %v2090_v15 }
  0x2a   : > { %1967 = vmatmul.mubr.msk.bf16.vlgmr.msra.gmra.mrb[4].mxu1 %vm681_vm3, %v2089_v17  ;;  %1973 = vmatmul.mubr.msk.bf16.vlgmr.msra.gmra.mrb[4].mxu0 %vm615_vm0, %v2255_v7 }
  0x2b   : > { %1977 = vmatpush3.bf16.msra.mxu0 %v2090_v15  ;;  %1989 = vmatpush3.bf16.msra.mxu1 %v2090_v15 }
  0x2c   : > { %1978 = vmatprep.mubr.msk.bf16.mxu0 %vm615_vm0, %v2216_v0  ;;  %1990 = vmatprep.mubr.msk.bf16.mxu1 %vm615_vm0, %v2221_v1 }
  0x2d   : > { %1982 = vmatprep.subr.bf16.mxu0 %v1039_v24  ;;  %1994 = vmatprep.subr.bf16.mxu1 %v2091_v25 }
  0x32   : > { %1979 = vmatmul.mubr.msk.bf16.vlgmr.msra.gmra.mrb[8].mxu0 %vm615_vm0, %v2250_v6  ;;  %1991 = vmatmul.mubr.msk.bf16.vlgmr.msra.gmra.mrb[8].mxu1 %vm615_vm0, %v2255_v7 }
  0x33   : > { %1983 = vmatpush3.bf16.msra.mxu0 %v1039_v24  ;;  %1995 = vmatpush3.bf16.msra.mxu1 %v2091_v25 }
  0x34   : > { %1996 = vmatprep.mubr.msk.bf16.mxu1 %vm615_vm0, %v2216_v0  ;;  %1984 = vmatprep.mubr.msk.bf16.mxu0 %vm681_vm3, %v2264_v12 }
  0x35   : > { %2006 = vmatprep.subr.bf16.mxu0 %v2091_v25  ;;  %2000 = vmatprep.subr.bf16.mxu1 %v1208_v29 }
  0x3a   : > { %1997 = vmatmul.mubr.msk.bf16.vlgmr.msra.gmra.mrb[12].mxu1 %vm615_vm0, %v2250_v6 }
  0x3b   : > { %2001 = vmatpush3.bf16.msra.mxu1 %v1208_v29  ;;  %2002 = vmatprep.mubr.msk.bf16.mxu1 %vm681_vm3, %v2264_v12 }
  0x3c   : > { %2024 = vmatprep.subr.bf16.mxu1 %v2092_v30 }
  0x3e   : > { %1985 = vmatmul.mubr.msk.bf16.vlgmr.msra.gmra.mrb[8].mxu0 %vm681_vm3, %v2089_v17 }
  0x3f   : > { %2007 = vmatpush3.bf16.msra.mxu0 %v2091_v25  ;;  %2008 = vmatprep.mubr.msk.bf16.mxu0 %vm615_vm0, %v2221_v1 }
  0x40   : > { %2012 = vmatprep.subr.bf16.mxu0 %v1340_v32 }
  0x46   : > { %2003 = vmatmul.mubr.msk.bf16.vlgmr.msra.gmra.mrb[12].mxu1 %vm681_vm3, %v2089_v17  ;;  %2009 = vmatmul.mubr.msk.bf16.vlgmr.msra.gmra.mrb[12].mxu0 %vm615_vm0, %v2255_v7 }
  0x47   : > { %2013 = vmatpush3.bf16.msra.mxu0 %v1340_v32  ;;  %2025 = vmatpush3.bf16.msra.mxu1 %v2092_v30 }
  0x48   : > { %2014 = vmatprep.mubr.msk.bf16.mxu0 %vm681_vm3, %v2093_v33  ;;  %2026 = vmatprep.mubr.msk.bf16.mxu1 %vm615_vm0, %v2094_v34 }
  0x49   : > { %2018 = vmatprep.subr.bf16.mxu0 %v2092_v30 }
  0x4e   : > { %2015 = vmatmul.mubr.msk.bf16.vlgmr.msra.gmra.mrb[16].mxu0 %vm681_vm3, %v2095_v35  ;;  %2027 = vmatmul.mubr.msk.bf16.vlgmr.msra.gmra.mrb[16].mxu1 %vm615_vm0, %v2096_v36 }
  0x4f   : > { %2019 = vmatpush3.bf16.msra.mxu0 %v2092_v30  ;;  %2020 = vmatprep.mubr.msk.bf16.mxu0 %vm615_vm0, %v2097_v37 }
  0x5a   : > { %2021 = vmatmul.mubr.msk.bf16.vlgmr.msra.gmra.mrb[16].mxu0 %vm615_vm0, %v2098_v38 }
  0x89   : > { %v2375_v7 = vpop.permute.xlu0 %1480  ;;  %v2377_v9 = vpop.permute.xlu1 %1490 }
  0x8d   : > { %v2379_v12 = vpop.permute.xlu0 %1485  ;;  %v2381_v18 = vpop.permute.xlu1 %1495 }
  0x93   : > { %v1598_v19 = vpop.permute.xlu0 %1597 }
  0x94   : > { %v1603_v36 = vpop.permute.xlu1 %1602 }
  0x99   : > { %v1608_v38 = vpop.permute.xlu0 %1607 }
  0xe9   : > { %v1956_v39 = vpop.f32.mrb[0].mxu1 }
  0xea   : > { %v794_v40 = vpop.f32.mrb[1].mxu1 }
  0xeb   : > { %v1957_v41 = vpop.f32.mrb[2].mxu1 }
  0xec   : > { %v797_v42 = vpop.f32.mrb[3].mxu1 }
  0xf5   : > { %v1950_v43 = vpop.f32.mrb[0].mxu0 }
  0xf6   : > { %v729_v44 = vpop.f32.mrb[1].mxu0 }
  0xf7   : > { %v1951_v45 = vpop.f32.mrb[2].mxu0 }
  0xf8   : > { %v732_v46 = vpop.f32.mrb[3].mxu0 }
  0xfd   : > { %v1968_v47 = vpop.f32.mrb[4].mxu1  ;;  %v1974_v48 = vpop.f32.mrb[4].mxu0 }
  0xfe   : > { %v923_v49 = vmax.f32 %v1950_v43, %v1968_v47  ;;  %v976_v50 = vmax.f32 %v1956_v39, %v1974_v48  ;;  %v906_v51 = vpop.f32.mrb[5].mxu1  ;;  %v959_v52 = vpop.f32.mrb[5].mxu0 }
  0xff   : > { %v921_v53 = vmax.f32 %v729_v44, %v906_v51  ;;  %v974_v54 = vmax.f32 %v794_v40, %v959_v52  ;;  %v1969_v55 = vpop.f32.mrb[6].mxu1  ;;  %v1975_v56 = vpop.f32.mrb[6].mxu0 }
 0x100   : > { %v924_v57 = vmax.f32 %v1951_v45, %v1969_v55  ;;  %v977_v58 = vmax.f32 %v1957_v41, %v1975_v56  ;;  %v909_v59 = vpop.f32.mrb[7].mxu1  ;;  %v962_v60 = vpop.f32.mrb[7].mxu0 }
 0x101   : > { %v922_v61 = vmax.f32 %v732_v46, %v909_v59  ;;  %v975_v62 = vmax.f32 %v797_v42, %v962_v60  ;;  %v1613_v43 = vpop.permute.xlu1 %1612 }
 0x105   : > { %v1992_v63 = vpop.f32.mrb[8].mxu1 }
 0x106   : > { %v1145_v0 = vmax.f32 %v976_v50, %v1992_v63  ;;  %v1128_v1 = vpop.f32.mrb[9].mxu1 }
 0x107   : > { %v1143_v2 = vmax.f32 %v974_v54, %v1128_v1  ;;  %v1993_v3 = vpop.f32.mrb[10].mxu1 }
 0x108   : > { %v1146_v4 = vmax.f32 %v977_v58, %v1993_v3  ;;  %v1131_v5 = vpop.f32.mrb[11].mxu1 }
 0x109   : > { %v1144_v6 = vmax.f32 %v975_v62, %v1131_v5 }
 0x111   : > { %v1986_v8 = vpop.f32.mrb[8].mxu0 }
 0x112   : > { %v1092_v10 = vmax.f32 %v923_v49, %v1986_v8  ;;  %v1075_v11 = vpop.f32.mrb[9].mxu0 }
 0x113   : > { %v1090_v13 = vmax.f32 %v921_v53, %v1075_v11  ;;  %v1987_v14 = vpop.f32.mrb[10].mxu0 }
 0x114   : > { %v1093_v15 = vmax.f32 %v924_v57, %v1987_v14  ;;  %v1078_v16 = vpop.f32.mrb[11].mxu0 }
 0x115   : > { %v1091_v17 = vmax.f32 %v922_v61, %v1078_v16 }
 0x119   : > { %v2004_v20 = vpop.f32.mrb[12].mxu1  ;;  %v2010_v21 = vpop.f32.mrb[12].mxu0 }
 0x11a   : > { %v1261_v22 = vmax.f32 %v1092_v10, %v2004_v20  ;;  %v1314_v23 = vmax.f32 %v1145_v0, %v2010_v21  ;;  %v1244_v24 = vpop.f32.mrb[13].mxu1  ;;  %v1297_v25 = vpop.f32.mrb[13].mxu0 }
 0x11b   : > { %v1259_v26 = vmax.f32 %v1090_v13, %v1244_v24  ;;  %v1312_v27 = vmax.f32 %v1143_v2, %v1297_v25  ;;  %v2005_v28 = vpop.f32.mrb[14].mxu1  ;;  %v2011_v29 = vpop.f32.mrb[14].mxu0 }
 0x11c   : > { %v1262_v30 = vmax.f32 %v1093_v15, %v2005_v28  ;;  %v1315_v31 = vmax.f32 %v1146_v4, %v2011_v29  ;;  %v1247_v32 = vpop.f32.mrb[15].mxu1  ;;  %v1300_v33 = vpop.f32.mrb[15].mxu0 }
 0x11d   : > { %v1260_v34 = vmax.f32 %v1091_v17, %v1247_v32  ;;  %v1313_v35 = vmax.f32 %v1144_v6, %v1300_v33 }
 0x121   : > { %v2028_v37 = vpop.f32.mrb[16].mxu1 }
 0x122   : > { %v1589_v39 = vadd.f32 %v2028_v37, %v1314_v23  ;;  %v1572_v40 = vpop.f32.mrb[17].mxu1 }
 0x123   : > { %v1587_v41 = vadd.f32 %v1572_v40, %v1312_v27  ;;  %v2029_v42 = vpop.f32.mrb[18].mxu1 }
 0x124   : > { %v1617_v44 = vadd.f32 %v1608_v38, %v1589_v39  ;;  %v1590_v45 = vadd.f32 %v2029_v42, %v1315_v31  ;;  %v1575_v46 = vpop.f32.mrb[19].mxu1 }
 0x125   : > { %v1615_v47 = vadd.f32 %v1598_v19, %v1587_v41  ;;  %v1588_v48 = vadd.f32 %v1575_v46, %v1313_v35 }
 0x126   : > { %vm1621_vm4 = vcmp.gt.f32.partialorder %v1617_v44, 0.0  ;;  %v1625_v49 = vmul.f32 0.2, %v1617_v44  ;;  %v1618_v50 = vadd.f32 %v1613_v43, %v1590_v45 }
 0x127   : > { %vm1619_vm5 = vcmp.gt.f32.partialorder %v1615_v47, 0.0  ;;  %v1623_v51 = vmul.f32 0.2, %v1615_v47  ;;  %v1616_v52 = vadd.f32 %v1603_v36, %v1588_v48 }
 0x128   : > { %v1629_v53 = vsel %vm1621_vm4, %v1617_v44, %v1625_v49  ;;  %vm1622_vm6 = vcmp.gt.f32.partialorder %v1618_v50, 0.0  ;;  %v1626_v54 = vmul.f32 0.2, %v1618_v50 }
 0x129   : > { %v1627_v55 = vsel %vm1619_vm5, %v1615_v47, %v1623_v51  ;;  %1633 = vst.msk [vmem:[%s582_s22 + $0x10] sm:$0xff] %vm615_vm0, %v1629_v53  ;;  %vm1620_vm7 = vcmp.gt.f32.partialorder %v1616_v52, 0.0  ;;  %v1624_v56 = vmul.f32 0.2, %v1616_v52 }
 0x12a   : > { %1631 = vst.msk [vmem:[%s582_s22] sm:$0xff] %vm615_vm0, %v1627_v55  ;;  %v1630_v57 = vsel %vm1622_vm6, %v1618_v50, %v1626_v54 }
 0x12b   : > { %v1628_v58 = vsel %vm1620_vm7, %v1616_v52, %v1624_v56  ;;  %1634 = vst.msk [vmem:[%s582_s22 + $0x18] sm:$0xff] %vm615_vm0, %v1630_v57 }
 0x12c   : > { %1632 = vst.msk [vmem:[%s582_s22 + $0x8] sm:$0xff] %vm615_vm0, %v1628_v58 }
 0x12d   : > { %v2022_v59 = vpop.f32.mrb[16].mxu0 }
 0x12e   : > { %v2030_v60 = vadd.f32 %v2022_v59, %v1261_v22  ;;  %v1455_v61 = vpop.f32.mrb[17].mxu0 }
 0x12f   : > { %v2031_v62 = vadd.f32 %v1455_v61, %v1259_v26  ;;  %v2023_v63 = vpop.f32.mrb[18].mxu0 }
 0x130   : > { %v1500_v0 = vadd.f32 %v2030_v60, %v2377_v9  ;;  %v2032_v1 = vadd.f32 %v2023_v63, %v1262_v30  ;;  %v1458_v2 = vpop.f32.mrb[19].mxu0 }
 0x131   : > { %v1498_v3 = vadd.f32 %v2031_v62, %v2375_v7  ;;  %v2033_v4 = vadd.f32 %v1458_v2, %v1260_v34 }
 0x132   : > { %vm1504_vm8 = vcmp.gt.f32.partialorder %v1500_v0, 0.0  ;;  %v1508_v5 = vmul.f32 0.2, %v1500_v0  ;;  %v1501_v6 = vadd.f32 %v2032_v1, %v2381_v18 }
 0x133   : > { %vm1502_vm9 = vcmp.gt.f32.partialorder %v1498_v3, 0.0  ;;  %v1506_v8 = vmul.f32 0.2, %v1498_v3  ;;  %v1499_v10 = vadd.f32 %v2033_v4, %v2379_v12 }
 0x134   : > { %v1512_v11 = vsel %vm1504_vm8, %v1500_v0, %v1508_v5  ;;  %vm1505_vm10 = vcmp.gt.f32.partialorder %v1501_v6, 0.0  ;;  %v1509_v9 = vmul.f32 0.2, %v1501_v6 }
 0x135   : > { %1516 = vst.msk [vmem:[%s574_s14 + $0x10] sm:$0xff] %vm615_vm0, %v1512_v11  ;;  %v1510_v13 = vsel %vm1502_vm9, %v1498_v3, %v1506_v8  ;;  %vm1503_vm11 = vcmp.gt.f32.partialorder %v1499_v10, 0.0  ;;  %v1507_v7 = vmul.f32 0.2, %v1499_v10 }
 0x136   : > { %1514 = vst.msk [vmem:[%s574_s14] sm:$0xff] %vm615_vm0, %v1510_v13  ;;  %v1513_v14 = vsel %vm1505_vm10, %v1501_v6, %v1509_v9 }
 0x137   : > { %1517 = vst.msk [vmem:[%s574_s14 + $0x18] sm:$0xff] %vm615_vm0, %v1513_v14  ;;  %v1511_v15 = vsel %vm1503_vm11, %v1499_v10, %v1507_v7 }
 0x138   : > { %1515 = vst.msk [vmem:[%s574_s14 + $0x8] sm:$0xff] %vm615_vm0, %v1511_v15 }
 0x139 PF: > { %s24_s27 = sadd.s32 1, %s2121_s27   ;;  %s2426_s25 = smov %s2117_s26 }
 0x13a   : > { %p21_p5 = scmp.ge.s32.totalorder %s24_s27, 4   ;;  %s2427_s26 = smov %s2429_s28 }
 0x13c   :  { %23 = sbr.rel (!%p21_p5) target bundleno = 2 (0x2), region = 125 }

// kernel: model_forward.11
= control target key start
LH: loop header
LB: loop body
LE: loop exit
PB: predicated region body
PF: predicated region fallthrough
CT: control target
= control target key end

     0   :  { %s1027_s18 = smov 0   ;;  %s1029_s19 = smov 0   ;;  %s1106_s0 = inlined_call_operand.vmem [shape: bf16[2,4,32,16], index: 0, kind: input, shape index: {}]   ;;  %s1107_s1 = inlined_call_operand.vmem [shape: bf16[2,32,16], index: 1, kind: input, shape index: {}]   ;;  %s1108_s2 = inlined_call_operand.vmem [shape: bf16[32,32], index: 2, kind: input, shape index: {}]   ;;  %s1109_s3 = inlined_call_operand.vmem [shape: bf16[32,32], index: 3, kind: input, shape index: {}]   ;;  %s1110_s4 = inlined_call_operand.vmem [shape: f32[32,1], index: 4, kind: input, shape index: {}]   ;;  %s1111_s5 = inlined_call_operand.vmem [shape: f32[2,32,16], index: 5, kind: output, shape index: {}]  }
   0x1   :  { %s1031_s20 = smov 0  }
   0x2 LB: > { %s27_s21 = sadd.s32 1, %s990_s19  ;;  %p823_p0 = scmp.ge.s32.totalorder %s994_s20, 1  ;;  %s994_s20 = sphi %s1031_s20, %s15_s20   ;;  %s990_s19 = sphi %s1029_s19, %s1113_s19   ;;  %s986_s18 = sphi %s1027_s18, %s1112_s18  }
   0x3   : > { %p29_p1 = scmp.ge.s32.totalorder %s27_s21, 2  ;;  %p221_p2 = scmp.lt.s32.totalorder %s994_s20, 3 }
   0x5   : > { %s1115_s21 = smov (%p29_p1, %s27_s21), 0  ;;  %p222_p3 = pnand %p823_p0, %p221_p2 }
   0x6   : > { %p263_p4 = scmp.lt.s32.totalorder (!%p222_p3), %s986_s18, 1  ;;  %v962_v0 = vld [vmem:[%s1108_s2] sm:$0xff] (!%p222_p3)   ;;  %vm318_vm0 = vcmask (!%p222_p3), 261120   ;;  %v996_v1 = vmov (!%p222_p3), 0   ;;  %v675_v2 = vld [vmem:[%s1110_s4 + $0x10] sm:$0xff] (!%p222_p3)  ;;  %v676_v5 = vld [vmem:[%s1110_s4 + $0x18] sm:$0xff] (!%p222_p3) }
   0x7   : > { %225 = sbr.rel (%p222_p3) target bundleno = 265 (0x109), region = 40  ;;  %895 = vmatprep.mubr.msk.bf16.mxu0 (!%p222_p3), %vm318_vm0, %v962_v0  ;;  %903 = vmatprep.mubr.msk.bf16.mxu1 (!%p222_p3), %vm318_vm0, %v962_v0  ;;  %v673_v3 = vld [vmem:[%s1110_s4] sm:$0xff] (!%p222_p3)  ;;  %v674_v7 = vld [vmem:[%s1110_s4 + $0x8] sm:$0xff] (!%p222_p3)  ;;  %vm713_vm2 = vcmask (!%p222_p3), 130048  }
   0x8   : > { %957 = vset.pattern.permute.xlu1 (!%p222_p3), %v996_v1  ;;  %956 = vset.pattern.permute.xlu0 (!%p222_p3), %v996_v1  ;;  %v963_v12 = vld [vmem:[%s1108_s2 + $0x8] sm:$0xff] (!%p222_p3)   ;;  %v970_v17 = vld [vmem:[%s1109_s3] sm:$0xff] (!%p222_p3)  }
   0x9   : > { %689 = vperm.xlu1 (!%p222_p3), %957, %v675_v2   ;;  %679 = vperm.xlu0 (!%p222_p3), %956, %v673_v3   ;;  %v971_v18 = vld [vmem:[%s1109_s3 + $0x8] sm:$0xff] (!%p222_p3)  }
   0xd   : > { %694 = vperm.xlu1 (!%p222_p3), %957, %v676_v5   ;;  %684 = vperm.xlu0 (!%p222_p3), %956, %v674_v7  }
   0xe   : > { %s1117_s18 = smov (!%p263_p4, %s986_s18), 1 }
   0xf   : > { %s868_s24 = sshll.u32 %s1117_s18, 6  ;;  %s869_s11 = sshll.u32 %s1117_s18, 4 }
  0x10   : > { %s270_s6 = scalar_lea.vmem %s1106_s0, %s868_s24  ;;  %s278_s16 = scalar_lea.vmem %s1107_s1, %s869_s11 }
  0x11   : > { %v958_v4 = vld [vmem:[%s270_s6] sm:$0xff]   ;;  %v959_v6 = vld [vmem:[%s270_s6 + $0x10] sm:$0xff]   ;;  %v960_v8 = vld [vmem:[%s270_s6 + $0x8] sm:$0xff]   ;;  %s870_s25 = sshll.u32 %s1117_s18, 5 }
  0x12   : > { %891 = vmatprep.subr.bf16.mxu0 %v958_v4  ;;  %899 = vmatprep.subr.bf16.mxu1 %v959_v6  ;;  %v961_v9 = vld [vmem:[%s270_s6 + $0x18] sm:$0xff]   ;;  %v964_v10 = vld [vmem:[%s270_s6 + $0x20] sm:$0xff]   ;;  %v965_v11 = vld [vmem:[%s270_s6 + $0x30] sm:$0xff]   ;;  %s286_s28 = scalar_lea.vmem %s1111_s5, %s870_s25 }
  0x13   : > { %892 = vmatpush3.bf16.msra.mxu0 %v958_v4  ;;  %900 = vmatpush3.bf16.msra.mxu1 %v959_v6  ;;  %v966_v13 = vld [vmem:[%s270_s6 + $0x28] sm:$0xff]   ;;  %v967_v14 = vld [vmem:[%s270_s6 + $0x38] sm:$0xff]   ;;  %v968_v15 = vld [vmem:[%s278_s16] sm:$0xff]  }
  0x14   : > { %893 = vmatprep.subr.bf16.mxu0 %v960_v8  ;;  %901 = vmatprep.subr.bf16.mxu1 %v961_v9  ;;  %v969_v16 = vld [vmem:[%s278_s16 + $0x8] sm:$0xff]  }
  0x17   : > { %894 = vmatpush3.bf16.msra.mxu0 %v960_v8  ;;  %902 = vmatpush3.bf16.msra.mxu1 %v961_v9 }
  0x18   : > { %907 = vmatprep.subr.bf16.mxu0 %v964_v10  ;;  %915 = vmatprep.subr.bf16.mxu1 %v965_v11 }
  0x1a   : > { %896 = vmatmul.mubr.msk.bf16.vlgmr.msra.gmra.mrb[0].mxu0 %vm318_vm0, %v963_v12  ;;  %904 = vmatmul.mubr.msk.bf16.vlgmr.msra.gmra.mrb[0].mxu1 %vm318_vm0, %v963_v12 }
  0x1b   : > { %908 = vmatpush3.bf16.msra.mxu0 %v964_v10  ;;  %916 = vmatpush3.bf16.msra.mxu1 %v965_v11 }
  0x1c   : > { %909 = vmatprep.subr.bf16.mxu0 %v966_v13  ;;  %917 = vmatprep.subr.bf16.mxu1 %v967_v14 }
  0x1d   : > { %911 = vmatprep.mubr.msk.bf16.mxu0 %vm318_vm0, %v962_v0  ;;  %919 = vmatprep.mubr.msk.bf16.mxu1 %vm318_vm0, %v962_v0 }
  0x1f   : > { %910 = vmatpush3.bf16.msra.mxu0 %v966_v13  ;;  %918 = vmatpush3.bf16.msra.mxu1 %v967_v14 }
  0x20   : > { %923 = vmatprep.subr.bf16.mxu0 %v968_v15 }
  0x22   : > { %912 = vmatmul.mubr.msk.bf16.vlgmr.msra.gmra.mrb[4].mxu0 %vm318_vm0, %v963_v12  ;;  %920 = vmatmul.mubr.msk.bf16.vlgmr.msra.gmra.mrb[4].mxu1 %vm318_vm0, %v963_v12 }
  0x23   : > { %924 = vmatpush3.bf16.msra.mxu0 %v968_v15  ;;  %927 = vmatprep.mubr.msk.bf16.mxu0 %vm318_vm0, %v970_v17 }
  0x24   : > { %925 = vmatprep.subr.bf16.mxu0 %v969_v16 }
  0x27   : > { %926 = vmatpush3.bf16.msra.mxu0 %v969_v16 }
  0x2a   : > { %928 = vmatmul.mubr.msk.bf16.vlgmr.msra.gmra.mrb[8].mxu0 %vm318_vm0, %v971_v18 }
  0x88   : > { %v690_v47 = vpop.permute.xlu1 %689  ;;  %v680_v48 = vpop.permute.xlu0 %679 }
  0x8c   : > { %v695_v58 = vpop.permute.xlu1 %694  ;;  %v685_v61 = vpop.permute.xlu0 %684 }
  0xed   : > { %v897_v19 = vpop.f32.mrb[0].mxu0  ;;  %v905_v20 = vpop.f32.mrb[0].mxu1 }
  0xee   : > { %v359_v21 = vpop.f32.mrb[1].mxu0  ;;  %v442_v22 = vmax.f32 %v897_v19, %v905_v20  ;;  %v425_v23 = vpop.f32.mrb[1].mxu1 }
  0xef   : > { %v898_v24 = vpop.f32.mrb[2].mxu0  ;;  %v440_v25 = vmax.f32 %v359_v21, %v425_v23  ;;  %v906_v26 = vpop.f32.mrb[2].mxu1 }
  0xf0   : > { %v362_v27 = vpop.f32.mrb[3].mxu0  ;;  %v443_v28 = vmax.f32 %v898_v24, %v906_v26  ;;  %v428_v29 = vpop.f32.mrb[3].mxu1 }
  0xf1   : > { %v441_v30 = vmax.f32 %v362_v27, %v428_v29 }
  0xf5   : > { %v913_v31 = vpop.f32.mrb[4].mxu0  ;;  %v921_v34 = vpop.f32.mrb[4].mxu1 }
  0xf6   : > { %v512_v32 = vmax.f32 %v442_v22, %v913_v31  ;;  %v495_v33 = vpop.f32.mrb[5].mxu0  ;;  %v565_v37 = vpop.f32.mrb[5].mxu1 }
  0xf7   : > { %v510_v35 = vmax.f32 %v440_v25, %v495_v33  ;;  %v914_v36 = vpop.f32.mrb[6].mxu0  ;;  %v922_v41 = vpop.f32.mrb[6].mxu1 }
  0xf8   : > { %v513_v38 = vmax.f32 %v443_v28, %v914_v36  ;;  %v582_v39 = vmax.f32 %v512_v32, %v921_v34  ;;  %v498_v40 = vpop.f32.mrb[7].mxu0  ;;  %v568_v44 = vpop.f32.mrb[7].mxu1 }
  0xf9   : > { %v511_v42 = vmax.f32 %v441_v30, %v498_v40  ;;  %v580_v43 = vmax.f32 %v510_v35, %v565_v37 }
  0xfa   : > { %v583_v45 = vmax.f32 %v513_v38, %v922_v41 }
  0xfb   : > { %v581_v46 = vmax.f32 %v511_v42, %v568_v44 }
  0xfd   : > { %v929_v49 = vpop.f32.mrb[8].mxu0 }
  0xfe   : > { %v671_v50 = vadd.f32 %v929_v49, %v582_v39  ;;  %v654_v51 = vpop.f32.mrb[9].mxu0 }
  0xff   : > { %v669_v52 = vadd.f32 %v654_v51, %v580_v43  ;;  %v930_v53 = vpop.f32.mrb[10].mxu0 }
 0x100   : > { %v699_v54 = vadd.f32 %v690_v47, %v671_v50  ;;  %v672_v55 = vadd.f32 %v930_v53, %v583_v45  ;;  %v657_v56 = vpop.f32.mrb[11].mxu0 }
 0x101   : > { %v697_v57 = vadd.f32 %v680_v48, %v669_v52  ;;  %v670_v59 = vadd.f32 %v657_v56, %v581_v46 }
 0x102   : > { %vm703_vm1 = vcmp.gt.f32.partialorder %v699_v54, 0.0  ;;  %v707_v60 = vmul.f32 0.2, %v699_v54  ;;  %v700_v62 = vadd.f32 %v695_v58, %v672_v55 }
 0x103   : > { %vm701_vm3 = vcmp.gt.f32.partialorder %v697_v57, 0.0  ;;  %v705_v63 = vmul.f32 0.2, %v697_v57  ;;  %v698_v0 = vadd.f32 %v685_v61, %v670_v59 }
 0x104   : > { %v711_v1 = vsel %vm703_vm1, %v699_v54, %v707_v60  ;;  %vm704_vm4 = vcmp.gt.f32.partialorder %v700_v62, 0.0  ;;  %v708_v2 = vmul.f32 0.2, %v700_v62 }
 0x105   : > { %716 = vst.msk [vmem:[%s286_s28 + $0x10] sm:$0xff] %vm713_vm2, %v711_v1  ;;  %v709_v3 = vsel %vm701_vm3, %v697_v57, %v705_v63  ;;  %vm702_vm5 = vcmp.gt.f32.partialorder %v698_v0, 0.0  ;;  %v706_v4 = vmul.f32 0.2, %v698_v0 }
 0x106   : > { %714 = vst.msk [vmem:[%s286_s28] sm:$0xff] %vm713_vm2, %v709_v3  ;;  %v712_v5 = vsel %vm704_vm4, %v700_v62, %v708_v2 }
 0x107   : > { %717 = vst.msk [vmem:[%s286_s28 + $0x18] sm:$0xff] %vm713_vm2, %v712_v5  ;;  %v710_v6 = vsel %vm702_vm5, %v698_v0, %v706_v4 }
 0x108   : > { %715 = vst.msk [vmem:[%s286_s28 + $0x8] sm:$0xff] %vm713_vm2, %v710_v6 }
 0x109 PF: > { %s15_s20 = sadd.s32 1, %s994_s20   ;;  %s1112_s18 = smov %s990_s19 }
 0x10a   : > { %p12_p5 = scmp.ge.s32.totalorder %s15_s20, 4   ;;  %s1113_s19 = smov %s1115_s21 }
 0x10c   :  { %14 = sbr.rel (!%p12_p5) target bundleno = 2 (0x2), region = 76 }

</bundles_post_ra>
